<compile_context>
chip_gen: v7x
topology: tpu7x:2x2x1
jax: 0.10.0
libtpu: 0.0.40
codegen_flags: <defaults>
</compile_context>

<pallas_src>
import functools

import jax
import jax.numpy as jnp
import numpy as np
from jax import lax
from jax.experimental import pallas as pl
from jax.experimental.pallas import tpu as pltpu

# ------------------------- config (from AS-MAML config) ----------------------
NHID = 32
POOLING_RATIO = 0.5
NUM_FEATURES = 1
NUM_CLASSES = 30
NEG_SLOPE = 0.1          # F.leaky_relu(..., negative_slope=0.1)
_BIG = 1e30              # "-inf" surrogate for masked max (keeps values finite)


def _leaky(v):
    return jnp.where(v > 0, v, NEG_SLOPE * v)


# ------------------------------ fused Pallas kernel ---------------------------
def fused_forward_kernel(
        x_ref, adj_ref, batch_col_ref, batch_row_ref,
        w1_ref, b1_ref, w2_ref, b2_ref, w3_ref, b3_ref,
        p1_ref, p2_ref, p3_ref,
        wl1_ref, bl1_ref, wl2_ref, bl2_ref, wl3_ref, bl3_ref,
        logits_ref, score_ref,
        *, num_graphs):
    # TODO(synk): for large N, tile the [N,N] work over node-row blocks with a
    # grid ("parallel" row axis, explicit vmem_limit_bytes) — v7x VMEM is 64 MiB.
    n = adj_ref.shape[0]
    f32 = jnp.float32

    # ---- static index helpers (hoisted, built once) --------------------------
    row_i = lax.broadcasted_iota(jnp.int32, (n, n), 0)
    col_j = lax.broadcasted_iota(jnp.int32, (n, n), 1)
    eye = (row_i == col_j).astype(f32)                         # [N,N] identity
    idx_col = lax.broadcasted_iota(jnp.int32, (n, 1), 0)       # node idx (col)
    idx_row = lax.broadcasted_iota(jnp.int32, (1, n), 1)       # node idx (row)
    bc = batch_col_ref[...]                                    # [N,1] int32
    br = batch_row_ref[...]                                    # [1,N] int32
    same = (bc == br).astype(f32)                              # [N,N] same-graph
    member = (lax.broadcasted_iota(jnp.int32, (num_graphs, n), 0) == br
              ).astype(f32)                                    # [G,N] one-hot
    g_col = lax.broadcasted_iota(jnp.int32, (num_graphs, 1), 0)
    adj0 = adj_ref[...]                                        # [N,N]

    def rowize(v_col):   # [N,1] column -> [1,N] row without an explicit transpose
        return jnp.sum(eye * v_col, axis=0, keepdims=True)

    # ---- building blocks ------------------------------------------------------
    def gcn(a_masked, alive_col, xw, b_row):
        # leaky( D^-1/2 (A_kept + I_kept) D^-1/2 @ xw + b ).  A is symmetric, so
        # column degrees are the (rowized) row degrees: one reduction + one rsqrt.
        a_hat = a_masked + eye * alive_col                     # self-loops on kept
        deg = jnp.sum(a_hat, axis=1, keepdims=True)            # [N,1]
        dr = jnp.where(deg > 0, lax.rsqrt(deg), 0.0)
        a_norm = dr * a_hat * rowize(dr)
        return _leaky(jnp.dot(a_norm, xw, preferred_element_type=f32) + b_row)

    def pool(h, a_cur, alive_col, alive_row, p_row):
        # TopKPooling: score = tanh((h @ p)/||p||); keep per-graph top
        # ceil(ratio * n_g).  Rank via pairwise compare matrix (no sort).
        # TODO(synk): tie-breaking of exactly-equal scores is by node index,
        # which may differ from PyTorch's sort order.
        inv_pn = lax.rsqrt(jnp.sum(p_row * p_row, axis=1, keepdims=True))
        s_col = jnp.tanh(jnp.sum(h * p_row, axis=1, keepdims=True) * inv_pn)
        s_row = rowize(s_col)
        alive_same = same * alive_row                          # [N,N]
        beats = alive_same * jnp.where(
            (s_row > s_col) | ((s_row == s_col) & (idx_row < idx_col)), 1.0, 0.0)
        rank = jnp.sum(beats, axis=1, keepdims=True)           # [N,1]
        n_g = jnp.sum(alive_same, axis=1, keepdims=True)       # alive in my graph
        k_g = jnp.ceil(POOLING_RATIO * n_g)
        keep_col = alive_col * jnp.where(rank < k_g, 1.0, 0.0)
        keep_row = rowize(keep_col)
        h_pool = h * s_col                                     # x * tanh(score)
        a_new = a_cur * keep_col * keep_row                    # filter_adj
        return h_pool, a_new, keep_col, keep_row

    def readout(h_pool, keep_col, keep_row):
        # global_max_pool / global_mean_pool over kept nodes, per graph.
        h_read = h_pool * keep_col
        sums = jnp.dot(member, h_read, preferred_element_type=f32)   # [G,H]
        counts = jnp.sum(member * keep_row, axis=1, keepdims=True)   # [G,1]
        mean = sums / jnp.maximum(counts, 1.0)                 # empty-graph safe
        mx = jnp.zeros_like(sums)
        for g in range(num_graphs):                            # static unroll
            mcol = jnp.where(bc == g, keep_col, 0.0)           # [N,1] member&kept
            rmax = jnp.max(h_pool + (mcol - 1.0) * _BIG, axis=0, keepdims=True)
            mx = mx + jnp.where(g_col == g, rmax, 0.0)         # dense [G,H] build
        return mx, mean

    def info_score(a_cur, h_pool, keep_col):
        # NodeInformationScore: mean_n sum_f | (I_kept - D^-1/2 A D^-1/2) h |
        deg = jnp.sum(a_cur, axis=1, keepdims=True)
        dr = jnp.where(deg > 0, lax.rsqrt(deg), 0.0)
        lap = eye * keep_col - dr * a_cur * rowize(dr)
        xi = jnp.dot(lap, h_pool, preferred_element_type=f32)
        node_score = jnp.sum(jnp.abs(xi), axis=1, keepdims=True)      # [N,1]
        denom = jnp.maximum(jnp.sum(keep_col, axis=0, keepdims=True), 1.0)
        return jnp.sum(node_score * keep_col, axis=0, keepdims=True) / denom

    # ---- layer 1 --------------------------------------------------------------
    ones_col = jnp.ones((n, 1), f32)
    ones_row = jnp.ones((1, n), f32)
    x = x_ref[...]
    if x_ref.shape[1] == 1:
        xw1 = x * w1_ref[...]      # F==1: rank-1 MXU matmul -> VPU broadcast mul
    else:
        xw1 = jnp.dot(x, w1_ref[...], preferred_element_type=f32)
    h = gcn(adj0, ones_col, xw1, b1_ref[...])
    h, a_cur, keep_c, keep_r = pool(h, adj0, ones_col, ones_row, p1_ref[...])
    mx1, mean1 = readout(h, keep_c, keep_r)

    # ---- layer 2 --------------------------------------------------------------
    xw2 = jnp.dot(h, w2_ref[...], preferred_element_type=f32)
    h = gcn(a_cur, keep_c, xw2, b2_ref[...])
    h, a_cur, keep_c, keep_r = pool(h, a_cur, keep_c, keep_r, p2_ref[...])
    mx2, mean2 = readout(h, keep_c, keep_r)

    # ---- layer 3 + information score ------------------------------------------
    xw3 = jnp.dot(h, w3_ref[...], preferred_element_type=f32)
    h = gcn(a_cur, keep_c, xw3, b3_ref[...])
    h, a_cur, keep_c, keep_r = pool(h, a_cur, keep_c, keep_r, p3_ref[...])
    score_ref[...] = info_score(a_cur, h, keep_c)
    mx3, mean3 = readout(h, keep_c, keep_r)

    # ---- fused MLP head --------------------------------------------------------
    # cat([max, mean]) @ wl1 == max @ wl1[:H] + mean @ wl1[H:]   (no concat op)
    mx_sum = _leaky(mx1) + _leaky(mx2) + _leaky(mx3)
    mean_sum = _leaky(mean1) + _leaky(mean2) + _leaky(mean3)
    wl1 = wl1_ref[...]
    nh = wl1.shape[0] // 2
    h1 = _leaky(jnp.dot(mx_sum, wl1[:nh, :], preferred_element_type=f32)
                + jnp.dot(mean_sum, wl1[nh:, :], preferred_element_type=f32)
                + bl1_ref[...])
    h2 = _leaky(jnp.dot(h1, wl2_ref[...], preferred_element_type=f32)
                + bl2_ref[...])
    logits_ref[...] = (jnp.dot(h2, wl3_ref[...], preferred_element_type=f32)
                       + bl3_ref[...])


# ------------------------------- wrapper --------------------------------------
def forward(x, adj, batch, params, num_graphs):
    """Returns (logits [G, C], info-score mean scalar, None)."""
    n = x.shape[0]
    batch_i32 = batch.astype(jnp.int32)
    batch_col = batch_i32.reshape(n, 1)
    batch_row = batch_i32.reshape(1, n)

    in_specs = [pl.BlockSpec(memory_space=pltpu.MemorySpace.VMEM)
                for _ in range(19)]
    out_specs = (pl.BlockSpec(memory_space=pltpu.MemorySpace.VMEM),
                 pl.BlockSpec(memory_space=pltpu.MemorySpace.VMEM))

    logits, score = pl.pallas_call(
        functools.partial(fused_forward_kernel, num_graphs=num_graphs),
        out_shape=(jax.ShapeDtypeStruct((num_graphs, NUM_CLASSES), jnp.float32),
                   jax.ShapeDtypeStruct((1, 1), jnp.float32)),
        in_specs=in_specs,
        out_specs=out_specs,
    )(x, adj, batch_col, batch_row,
      params["w1"], params["b1"], params["w2"], params["b2"],
      params["w3"], params["b3"],
      params["p1"], params["p2"], params["p3"],
      params["wl1"], params["bl1"], params["wl2"], params["bl2"],
      params["wl3"], params["bl3"])
    return logits, score[0, 0], None


def init_params(key):
    ks = jax.random.split(key, 12)
    s = 0.1
    return {
        "w1": s * jax.random.normal(ks[0], (NUM_FEATURES, NHID), jnp.float32),
        "b1": jnp.zeros((1, NHID), jnp.float32),
        "w2": s * jax.random.normal(ks[1], (NHID, NHID), jnp.float32),
        "b2": jnp.zeros((1, NHID), jnp.float32),
        "w3": s * jax.random.normal(ks[2], (NHID, NHID), jnp.float32),
        "b3": jnp.zeros((1, NHID), jnp.float32),
        # TopKPooling projection vectors, row layout [1, H] (PyG native shape).
        "p1": jax.random.normal(ks[3], (1, NHID), jnp.float32),
        "p2": jax.random.normal(ks[4], (1, NHID), jnp.float32),
        "p3": jax.random.normal(ks[5], (1, NHID), jnp.float32),
        "wl1": s * jax.random.normal(ks[6], (2 * NHID, NHID), jnp.float32),
        "bl1": s * jax.random.normal(ks[7], (1, NHID), jnp.float32),
        "wl2": s * jax.random.normal(ks[8], (NHID, NHID // 2), jnp.float32),
        "bl2": s * jax.random.normal(ks[9], (1, NHID // 2), jnp.float32),
        "wl3": s * jax.random.normal(ks[10], (NHID // 2, NUM_CLASSES), jnp.float32),
        "bl3": s * jax.random.normal(ks[11], (1, NUM_CLASSES), jnp.float32),
    }


if __name__ == "__main__":
    key = jax.random.PRNGKey(0)

    # small synthetic batched graph: 2 graphs x 8 nodes = 16 nodes
    N, G = 16, 2
    nodes_per_graph = N // G
    batch = jnp.repeat(jnp.arange(G, dtype=jnp.int32), nodes_per_graph)

    adj_np = np.zeros((N, N), np.float32)
    for g in range(G):
        off = g * nodes_per_graph
        for i in range(nodes_per_graph):          # ring within each graph
            j = (i + 1) % nodes_per_graph
            adj_np[off + i, off + j] = 1.0
            adj_np[off + j, off + i] = 1.0
        adj_np[off, off + nodes_per_graph // 2] = 1.0   # one chord
        adj_np[off + nodes_per_graph // 2, off] = 1.0
    adj = jnp.asarray(adj_np)

    kx, kp = jax.random.split(key)
    x = jax.random.normal(kx, (N, NUM_FEATURES), jnp.float32)
    params = init_params(kp)

    logits, score_mean, _ = forward(x, adj, batch, params, G)
    jax.block_until_ready((logits, score_mean))

    assert logits.shape == (G, NUM_CLASSES)
    assert jnp.isfinite(logits).all()
    assert jnp.isfinite(score_mean)
    print("KERNEL_OK")
</pallas_src>

<mosaic_0001>
module attributes {stable_mosaic.version = 11 : i64} {
  func.func @fused_forward_kernel(%arg0: memref<16x1xf32, #tpu.memory_space<vmem>>, %arg1: memref<16x16xf32, #tpu.memory_space<vmem>>, %arg2: memref<16x1xi32, #tpu.memory_space<vmem>>, %arg3: memref<1x16xi32, #tpu.memory_space<vmem>>, %arg4: memref<1x32xf32, #tpu.memory_space<vmem>>, %arg5: memref<1x32xf32, #tpu.memory_space<vmem>>, %arg6: memref<32x32xf32, #tpu.memory_space<vmem>>, %arg7: memref<1x32xf32, #tpu.memory_space<vmem>>, %arg8: memref<32x32xf32, #tpu.memory_space<vmem>>, %arg9: memref<1x32xf32, #tpu.memory_space<vmem>>, %arg10: memref<1x32xf32, #tpu.memory_space<vmem>>, %arg11: memref<1x32xf32, #tpu.memory_space<vmem>>, %arg12: memref<1x32xf32, #tpu.memory_space<vmem>>, %arg13: memref<64x32xf32, #tpu.memory_space<vmem>>, %arg14: memref<1x32xf32, #tpu.memory_space<vmem>>, %arg15: memref<32x16xf32, #tpu.memory_space<vmem>>, %arg16: memref<1x16xf32, #tpu.memory_space<vmem>>, %arg17: memref<16x30xf32, #tpu.memory_space<vmem>>, %arg18: memref<1x30xf32, #tpu.memory_space<vmem>>, %arg19: memref<2x30xf32, #tpu.memory_space<vmem>>, %arg20: memref<1x1xf32, #tpu.memory_space<vmem>>) attributes {dimension_semantics = [], scalar_prefetch = 0 : i64, scratch_operands = 0 : i64, tpu.core_type = #tpu.core_type<tc>} {
    %0 = tpu.iota {dimensions = array<i32: 0>} : vector<16x16xi32>
    %1 = tpu.iota {dimensions = array<i32: 1>} : vector<16x16xi32>
    %2 = arith.cmpi eq, %0, %1 : vector<16x16xi32>
    %3 = arith.extui %2 : vector<16x16xi1> to vector<16x16xi32>
    %4 = arith.sitofp %3 : vector<16x16xi32> to vector<16x16xf32>
    %5 = tpu.iota {dimensions = array<i32: 0>} : vector<16x1xi32>
    %6 = tpu.iota {dimensions = array<i32: 1>} : vector<1x16xi32>
    %c0 = arith.constant 0 : index
    %c0_0 = arith.constant 0 : index
    %7 = vector.load %arg2[%c0, %c0_0] : memref<16x1xi32, #tpu.memory_space<vmem>>, vector<16x1xi32>
    %c0_1 = arith.constant 0 : index
    %c0_2 = arith.constant 0 : index
    %8 = vector.load %arg3[%c0_1, %c0_2] : memref<1x16xi32, #tpu.memory_space<vmem>>, vector<1x16xi32>
    %9 = vector.broadcast %7 : vector<16x1xi32> to vector<16x16xi32>
    %10 = vector.broadcast %8 : vector<1x16xi32> to vector<16x16xi32>
    %11 = arith.cmpi eq, %9, %10 : vector<16x16xi32>
    %12 = arith.extui %11 : vector<16x16xi1> to vector<16x16xi32>
    %13 = arith.sitofp %12 : vector<16x16xi32> to vector<16x16xf32>
    %14 = tpu.iota {dimensions = array<i32: 0>} : vector<2x16xi32>
    %15 = vector.broadcast %8 : vector<1x16xi32> to vector<2x16xi32>
    %16 = arith.cmpi eq, %14, %15 : vector<2x16xi32>
    %17 = arith.extui %16 : vector<2x16xi1> to vector<2x16xi32>
    %18 = arith.sitofp %17 : vector<2x16xi32> to vector<2x16xf32>
    %19 = tpu.iota {dimensions = array<i32: 0>} : vector<2x1xi32>
    %c0_3 = arith.constant 0 : index
    %c0_4 = arith.constant 0 : index
    %20 = vector.load %arg1[%c0_3, %c0_4] : memref<16x16xf32, #tpu.memory_space<vmem>>, vector<16x16xf32>
    %cst = arith.constant 1.000000e+00 : f32
    %21 = vector.broadcast %cst : f32 to vector<16x1xf32>
    %cst_5 = arith.constant 1.000000e+00 : f32
    %22 = vector.broadcast %cst_5 : f32 to vector<1x16xf32>
    %c0_6 = arith.constant 0 : index
    %c0_7 = arith.constant 0 : index
    %23 = vector.load %arg0[%c0_6, %c0_7] : memref<16x1xf32, #tpu.memory_space<vmem>>, vector<16x1xf32>
    %c0_8 = arith.constant 0 : index
    %c0_9 = arith.constant 0 : index
    %24 = vector.load %arg4[%c0_8, %c0_9] : memref<1x32xf32, #tpu.memory_space<vmem>>, vector<1x32xf32>
    %25 = vector.broadcast %23 : vector<16x1xf32> to vector<16x32xf32>
    %26 = vector.broadcast %24 : vector<1x32xf32> to vector<16x32xf32>
    %27 = arith.mulf %25, %26 : vector<16x32xf32>
    %c0_10 = arith.constant 0 : index
    %c0_11 = arith.constant 0 : index
    %28 = vector.load %arg5[%c0_10, %c0_11] : memref<1x32xf32, #tpu.memory_space<vmem>>, vector<1x32xf32>
    %29 = vector.broadcast %21 : vector<16x1xf32> to vector<16x16xf32>
    %30 = arith.mulf %4, %29 : vector<16x16xf32>
    %31 = arith.addf %20, %30 : vector<16x16xf32>
    %cst_12 = arith.constant dense<0.000000e+00> : vector<16xf32>
    %32 = vector.multi_reduction <add>, %31, %cst_12 [1] : vector<16x16xf32> to vector<16xf32>
    %33 = vector.shape_cast %32 : vector<16xf32> to vector<16x1xf32>
    %cst_13 = arith.constant 0.000000e+00 : f32
    %34 = vector.broadcast %cst_13 : f32 to vector<16x1xf32>
    %35 = arith.cmpf ogt, %33, %34 : vector<16x1xf32>
    %36 = math.rsqrt %33 : vector<16x1xf32>
    %cst_14 = arith.constant 0.000000e+00 : f32
    %37 = vector.broadcast %cst_14 : f32 to vector<16x1xf32>
    %38 = arith.select %35, %36, %37 : vector<16x1xi1>, vector<16x1xf32>
    %39 = vector.broadcast %38 : vector<16x1xf32> to vector<16x16xf32>
    %40 = arith.mulf %39, %31 : vector<16x16xf32>
    %41 = vector.broadcast %38 : vector<16x1xf32> to vector<16x16xf32>
    %42 = arith.mulf %4, %41 : vector<16x16xf32>
    %cst_15 = arith.constant dense<0.000000e+00> : vector<16xf32>
    %43 = vector.multi_reduction <add>, %42, %cst_15 [0] : vector<16x16xf32> to vector<16xf32>
    %44 = vector.shape_cast %43 : vector<16xf32> to vector<1x16xf32>
    %45 = vector.broadcast %44 : vector<1x16xf32> to vector<16x16xf32>
    %46 = arith.mulf %40, %45 : vector<16x16xf32>
    %cst_16 = arith.constant dense<0.000000e+00> : vector<16x32xf32>
    %47 = tpu.matmul %46, %27, %cst_16 {dimension_numbers = #tpu.dot_dimension_numbers<[1], [0], [0], [1], [0, 0, 1, 1], [], []>} : vector<16x16xf32>, vector<16x32xf32>, vector<16x32xf32> -> vector<16x32xf32>
    %48 = vector.broadcast %28 : vector<1x32xf32> to vector<16x32xf32>
    %49 = arith.addf %47, %48 : vector<16x32xf32>
    %cst_17 = arith.constant 0.000000e+00 : f32
    %50 = vector.broadcast %cst_17 : f32 to vector<16x32xf32>
    %51 = arith.cmpf ogt, %49, %50 : vector<16x32xf32>
    %cst_18 = arith.constant 1.000000e-01 : f32
    %52 = vector.broadcast %cst_18 : f32 to vector<16x32xf32>
    %53 = arith.mulf %52, %49 : vector<16x32xf32>
    %54 = arith.select %51, %49, %53 : vector<16x32xi1>, vector<16x32xf32>
    %c0_19 = arith.constant 0 : index
    %c0_20 = arith.constant 0 : index
    %55 = vector.load %arg10[%c0_19, %c0_20] : memref<1x32xf32, #tpu.memory_space<vmem>>, vector<1x32xf32>
    %56 = arith.mulf %55, %55 : vector<1x32xf32>
    %cst_21 = arith.constant dense<0.000000e+00> : vector<1xf32>
    %57 = vector.multi_reduction <add>, %56, %cst_21 [1] : vector<1x32xf32> to vector<1xf32>
    %58 = vector.shape_cast %57 : vector<1xf32> to vector<1x1xf32>
    %59 = math.rsqrt %58 : vector<1x1xf32>
    %60 = vector.broadcast %55 : vector<1x32xf32> to vector<16x32xf32>
    %61 = arith.mulf %54, %60 : vector<16x32xf32>
    %cst_22 = arith.constant dense<0.000000e+00> : vector<16xf32>
    %62 = vector.multi_reduction <add>, %61, %cst_22 [1] : vector<16x32xf32> to vector<16xf32>
    %63 = vector.shape_cast %62 : vector<16xf32> to vector<16x1xf32>
    %64 = vector.broadcast %59 : vector<1x1xf32> to vector<16x1xf32>
    %65 = arith.mulf %63, %64 : vector<16x1xf32>
    %66 = math.tanh %65 : vector<16x1xf32>
    %67 = vector.broadcast %66 : vector<16x1xf32> to vector<16x16xf32>
    %68 = arith.mulf %4, %67 : vector<16x16xf32>
    %cst_23 = arith.constant dense<0.000000e+00> : vector<16xf32>
    %69 = vector.multi_reduction <add>, %68, %cst_23 [0] : vector<16x16xf32> to vector<16xf32>
    %70 = vector.shape_cast %69 : vector<16xf32> to vector<1x16xf32>
    %71 = vector.broadcast %22 : vector<1x16xf32> to vector<16x16xf32>
    %72 = arith.mulf %13, %71 : vector<16x16xf32>
    %73 = vector.broadcast %70 : vector<1x16xf32> to vector<16x16xf32>
    %74 = vector.broadcast %66 : vector<16x1xf32> to vector<16x16xf32>
    %75 = arith.cmpf ogt, %73, %74 : vector<16x16xf32>
    %76 = vector.broadcast %70 : vector<1x16xf32> to vector<16x16xf32>
    %77 = vector.broadcast %66 : vector<16x1xf32> to vector<16x16xf32>
    %78 = arith.cmpf oeq, %76, %77 : vector<16x16xf32>
    %79 = vector.broadcast %6 : vector<1x16xi32> to vector<16x16xi32>
    %80 = vector.broadcast %5 : vector<16x1xi32> to vector<16x16xi32>
    %81 = arith.cmpi slt, %79, %80 : vector<16x16xi32>
    %82 = arith.andi %78, %81 : vector<16x16xi1>
    %83 = arith.ori %75, %82 : vector<16x16xi1>
    %cst_24 = arith.constant 1.000000e+00 : f32
    %cst_25 = arith.constant 0.000000e+00 : f32
    %84 = vector.broadcast %cst_24 : f32 to vector<16x16xf32>
    %85 = vector.broadcast %cst_25 : f32 to vector<16x16xf32>
    %86 = arith.select %83, %84, %85 : vector<16x16xi1>, vector<16x16xf32>
    %87 = arith.mulf %72, %86 : vector<16x16xf32>
    %cst_26 = arith.constant dense<0.000000e+00> : vector<16xf32>
    %88 = vector.multi_reduction <add>, %87, %cst_26 [1] : vector<16x16xf32> to vector<16xf32>
    %89 = vector.shape_cast %88 : vector<16xf32> to vector<16x1xf32>
    %cst_27 = arith.constant dense<0.000000e+00> : vector<16xf32>
    %90 = vector.multi_reduction <add>, %72, %cst_27 [1] : vector<16x16xf32> to vector<16xf32>
    %91 = vector.shape_cast %90 : vector<16xf32> to vector<16x1xf32>
    %cst_28 = arith.constant 5.000000e-01 : f32
    %92 = vector.broadcast %cst_28 : f32 to vector<16x1xf32>
    %93 = arith.mulf %92, %91 : vector<16x1xf32>
    %94 = math.ceil %93 : vector<16x1xf32>
    %95 = arith.cmpf olt, %89, %94 : vector<16x1xf32>
    %cst_29 = arith.constant 1.000000e+00 : f32
    %cst_30 = arith.constant 0.000000e+00 : f32
    %96 = vector.broadcast %cst_29 : f32 to vector<16x1xf32>
    %97 = vector.broadcast %cst_30 : f32 to vector<16x1xf32>
    %98 = arith.select %95, %96, %97 : vector<16x1xi1>, vector<16x1xf32>
    %99 = arith.mulf %21, %98 : vector<16x1xf32>
    %100 = vector.broadcast %99 : vector<16x1xf32> to vector<16x16xf32>
    %101 = arith.mulf %4, %100 : vector<16x16xf32>
    %cst_31 = arith.constant dense<0.000000e+00> : vector<16xf32>
    %102 = vector.multi_reduction <add>, %101, %cst_31 [0] : vector<16x16xf32> to vector<16xf32>
    %103 = vector.shape_cast %102 : vector<16xf32> to vector<1x16xf32>
    %104 = vector.broadcast %66 : vector<16x1xf32> to vector<16x32xf32>
    %105 = arith.mulf %54, %104 : vector<16x32xf32>
    %106 = vector.broadcast %99 : vector<16x1xf32> to vector<16x16xf32>
    %107 = arith.mulf %20, %106 : vector<16x16xf32>
    %108 = vector.broadcast %103 : vector<1x16xf32> to vector<16x16xf32>
    %109 = arith.mulf %107, %108 : vector<16x16xf32>
    %110 = vector.broadcast %99 : vector<16x1xf32> to vector<16x32xf32>
    %111 = arith.mulf %105, %110 : vector<16x32xf32>
    %cst_32 = arith.constant dense<0.000000e+00> : vector<2x32xf32>
    %112 = tpu.matmul %18, %111, %cst_32 {dimension_numbers = #tpu.dot_dimension_numbers<[1], [0], [0], [1], [0, 0, 1, 1], [], []>} : vector<2x16xf32>, vector<16x32xf32>, vector<2x32xf32> -> vector<2x32xf32>
    %113 = vector.broadcast %103 : vector<1x16xf32> to vector<2x16xf32>
    %114 = arith.mulf %18, %113 : vector<2x16xf32>
    %cst_33 = arith.constant dense<0.000000e+00> : vector<2xf32>
    %115 = vector.multi_reduction <add>, %114, %cst_33 [1] : vector<2x16xf32> to vector<2xf32>
    %116 = vector.shape_cast %115 : vector<2xf32> to vector<2x1xf32>
    %cst_34 = arith.constant 1.000000e+00 : f32
    %117 = vector.broadcast %cst_34 : f32 to vector<2x1xf32>
    %118 = arith.maximumf %116, %117 : vector<2x1xf32>
    %119 = vector.broadcast %118 : vector<2x1xf32> to vector<2x32xf32>
    %120 = arith.divf %112, %119 : vector<2x32xf32>
    %cst_35 = arith.constant 0.000000e+00 : f32
    %121 = vector.broadcast %cst_35 : f32 to vector<2x32xf32>
    %c0_i32 = arith.constant 0 : i32
    %122 = vector.broadcast %c0_i32 : i32 to vector<16x1xi32>
    %123 = arith.cmpi eq, %7, %122 : vector<16x1xi32>
    %cst_36 = arith.constant 0.000000e+00 : f32
    %124 = vector.broadcast %cst_36 : f32 to vector<16x1xf32>
    %125 = arith.select %123, %99, %124 : vector<16x1xi1>, vector<16x1xf32>
    %cst_37 = arith.constant 1.000000e+00 : f32
    %126 = vector.broadcast %cst_37 : f32 to vector<16x1xf32>
    %127 = arith.subf %125, %126 : vector<16x1xf32>
    %cst_38 = arith.constant 1.000000e+30 : f32
    %128 = vector.broadcast %cst_38 : f32 to vector<16x1xf32>
    %129 = arith.mulf %127, %128 : vector<16x1xf32>
    %130 = vector.broadcast %129 : vector<16x1xf32> to vector<16x32xf32>
    %131 = arith.addf %105, %130 : vector<16x32xf32>
    %cst_39 = arith.constant dense<0xFF800000> : vector<32xf32>
    %132 = vector.multi_reduction <maximumf>, %131, %cst_39 [0] : vector<16x32xf32> to vector<32xf32>
    %133 = vector.shape_cast %132 : vector<32xf32> to vector<1x32xf32>
    %c0_i32_40 = arith.constant 0 : i32
    %134 = vector.broadcast %c0_i32_40 : i32 to vector<2x1xi32>
    %135 = arith.cmpi eq, %19, %134 : vector<2x1xi32>
    %cst_41 = arith.constant 0.000000e+00 : f32
    %136 = vector.shape_cast %135 : vector<2x1xi1> to vector<2x1xi1>
    %137 = vector.broadcast %136 : vector<2x1xi1> to vector<2x32xi1>
    %138 = vector.shape_cast %133 : vector<1x32xf32> to vector<1x32xf32>
    %139 = vector.broadcast %138 : vector<1x32xf32> to vector<2x32xf32>
    %140 = vector.broadcast %cst_41 : f32 to vector<2x32xf32>
    %141 = arith.select %137, %139, %140 : vector<2x32xi1>, vector<2x32xf32>
    %142 = arith.addf %121, %141 : vector<2x32xf32>
    %c1_i32 = arith.constant 1 : i32
    %143 = vector.broadcast %c1_i32 : i32 to vector<16x1xi32>
    %144 = arith.cmpi eq, %7, %143 : vector<16x1xi32>
    %cst_42 = arith.constant 0.000000e+00 : f32
    %145 = vector.broadcast %cst_42 : f32 to vector<16x1xf32>
    %146 = arith.select %144, %99, %145 : vector<16x1xi1>, vector<16x1xf32>
    %cst_43 = arith.constant 1.000000e+00 : f32
    %147 = vector.broadcast %cst_43 : f32 to vector<16x1xf32>
    %148 = arith.subf %146, %147 : vector<16x1xf32>
    %cst_44 = arith.constant 1.000000e+30 : f32
    %149 = vector.broadcast %cst_44 : f32 to vector<16x1xf32>
    %150 = arith.mulf %148, %149 : vector<16x1xf32>
    %151 = vector.broadcast %150 : vector<16x1xf32> to vector<16x32xf32>
    %152 = arith.addf %105, %151 : vector<16x32xf32>
    %cst_45 = arith.constant dense<0xFF800000> : vector<32xf32>
    %153 = vector.multi_reduction <maximumf>, %152, %cst_45 [0] : vector<16x32xf32> to vector<32xf32>
    %154 = vector.shape_cast %153 : vector<32xf32> to vector<1x32xf32>
    %c1_i32_46 = arith.constant 1 : i32
    %155 = vector.broadcast %c1_i32_46 : i32 to vector<2x1xi32>
    %156 = arith.cmpi eq, %19, %155 : vector<2x1xi32>
    %cst_47 = arith.constant 0.000000e+00 : f32
    %157 = vector.shape_cast %156 : vector<2x1xi1> to vector<2x1xi1>
    %158 = vector.broadcast %157 : vector<2x1xi1> to vector<2x32xi1>
    %159 = vector.shape_cast %154 : vector<1x32xf32> to vector<1x32xf32>
    %160 = vector.broadcast %159 : vector<1x32xf32> to vector<2x32xf32>
    %161 = vector.broadcast %cst_47 : f32 to vector<2x32xf32>
    %162 = arith.select %158, %160, %161 : vector<2x32xi1>, vector<2x32xf32>
    %163 = arith.addf %142, %162 : vector<2x32xf32>
    %c0_48 = arith.constant 0 : index
    %c0_49 = arith.constant 0 : index
    %164 = vector.load %arg6[%c0_48, %c0_49] : memref<32x32xf32, #tpu.memory_space<vmem>>, vector<32x32xf32>
    %cst_50 = arith.constant dense<0.000000e+00> : vector<16x32xf32>
    %165 = tpu.matmul %105, %164, %cst_50 {dimension_numbers = #tpu.dot_dimension_numbers<[1], [0], [0], [1], [0, 0, 1, 1], [], []>} : vector<16x32xf32>, vector<32x32xf32>, vector<16x32xf32> -> vector<16x32xf32>
    %c0_51 = arith.constant 0 : index
    %c0_52 = arith.constant 0 : index
    %166 = vector.load %arg7[%c0_51, %c0_52] : memref<1x32xf32, #tpu.memory_space<vmem>>, vector<1x32xf32>
    %167 = vector.broadcast %99 : vector<16x1xf32> to vector<16x16xf32>
    %168 = arith.mulf %4, %167 : vector<16x16xf32>
    %169 = arith.addf %109, %168 : vector<16x16xf32>
    %cst_53 = arith.constant dense<0.000000e+00> : vector<16xf32>
    %170 = vector.multi_reduction <add>, %169, %cst_53 [1] : vector<16x16xf32> to vector<16xf32>
    %171 = vector.shape_cast %170 : vector<16xf32> to vector<16x1xf32>
    %cst_54 = arith.constant 0.000000e+00 : f32
    %172 = vector.broadcast %cst_54 : f32 to vector<16x1xf32>
    %173 = arith.cmpf ogt, %171, %172 : vector<16x1xf32>
    %174 = math.rsqrt %171 : vector<16x1xf32>
    %cst_55 = arith.constant 0.000000e+00 : f32
    %175 = vector.broadcast %cst_55 : f32 to vector<16x1xf32>
    %176 = arith.select %173, %174, %175 : vector<16x1xi1>, vector<16x1xf32>
    %177 = vector.broadcast %176 : vector<16x1xf32> to vector<16x16xf32>
    %178 = arith.mulf %177, %169 : vector<16x16xf32>
    %179 = vector.broadcast %176 : vector<16x1xf32> to vector<16x16xf32>
    %180 = arith.mulf %4, %179 : vector<16x16xf32>
    %cst_56 = arith.constant dense<0.000000e+00> : vector<16xf32>
    %181 = vector.multi_reduction <add>, %180, %cst_56 [0] : vector<16x16xf32> to vector<16xf32>
    %182 = vector.shape_cast %181 : vector<16xf32> to vector<1x16xf32>
    %183 = vector.broadcast %182 : vector<1x16xf32> to vector<16x16xf32>
    %184 = arith.mulf %178, %183 : vector<16x16xf32>
    %cst_57 = arith.constant dense<0.000000e+00> : vector<16x32xf32>
    %185 = tpu.matmul %184, %165, %cst_57 {dimension_numbers = #tpu.dot_dimension_numbers<[1], [0], [0], [1], [0, 0, 1, 1], [], []>} : vector<16x16xf32>, vector<16x32xf32>, vector<16x32xf32> -> vector<16x32xf32>
    %186 = vector.broadcast %166 : vector<1x32xf32> to vector<16x32xf32>
    %187 = arith.addf %185, %186 : vector<16x32xf32>
    %cst_58 = arith.constant 0.000000e+00 : f32
    %188 = vector.broadcast %cst_58 : f32 to vector<16x32xf32>
    %189 = arith.cmpf ogt, %187, %188 : vector<16x32xf32>
    %cst_59 = arith.constant 1.000000e-01 : f32
    %190 = vector.broadcast %cst_59 : f32 to vector<16x32xf32>
    %191 = arith.mulf %190, %187 : vector<16x32xf32>
    %192 = arith.select %189, %187, %191 : vector<16x32xi1>, vector<16x32xf32>
    %c0_60 = arith.constant 0 : index
    %c0_61 = arith.constant 0 : index
    %193 = vector.load %arg11[%c0_60, %c0_61] : memref<1x32xf32, #tpu.memory_space<vmem>>, vector<1x32xf32>
    %194 = arith.mulf %193, %193 : vector<1x32xf32>
    %cst_62 = arith.constant dense<0.000000e+00> : vector<1xf32>
    %195 = vector.multi_reduction <add>, %194, %cst_62 [1] : vector<1x32xf32> to vector<1xf32>
    %196 = vector.shape_cast %195 : vector<1xf32> to vector<1x1xf32>
    %197 = math.rsqrt %196 : vector<1x1xf32>
    %198 = vector.broadcast %193 : vector<1x32xf32> to vector<16x32xf32>
    %199 = arith.mulf %192, %198 : vector<16x32xf32>
    %cst_63 = arith.constant dense<0.000000e+00> : vector<16xf32>
    %200 = vector.multi_reduction <add>, %199, %cst_63 [1] : vector<16x32xf32> to vector<16xf32>
    %201 = vector.shape_cast %200 : vector<16xf32> to vector<16x1xf32>
    %202 = vector.broadcast %197 : vector<1x1xf32> to vector<16x1xf32>
    %203 = arith.mulf %201, %202 : vector<16x1xf32>
    %204 = math.tanh %203 : vector<16x1xf32>
    %205 = vector.broadcast %204 : vector<16x1xf32> to vector<16x16xf32>
    %206 = arith.mulf %4, %205 : vector<16x16xf32>
    %cst_64 = arith.constant dense<0.000000e+00> : vector<16xf32>
    %207 = vector.multi_reduction <add>, %206, %cst_64 [0] : vector<16x16xf32> to vector<16xf32>
    %208 = vector.shape_cast %207 : vector<16xf32> to vector<1x16xf32>
    %209 = vector.broadcast %103 : vector<1x16xf32> to vector<16x16xf32>
    %210 = arith.mulf %13, %209 : vector<16x16xf32>
    %211 = vector.broadcast %208 : vector<1x16xf32> to vector<16x16xf32>
    %212 = vector.broadcast %204 : vector<16x1xf32> to vector<16x16xf32>
    %213 = arith.cmpf ogt, %211, %212 : vector<16x16xf32>
    %214 = vector.broadcast %208 : vector<1x16xf32> to vector<16x16xf32>
    %215 = vector.broadcast %204 : vector<16x1xf32> to vector<16x16xf32>
    %216 = arith.cmpf oeq, %214, %215 : vector<16x16xf32>
    %217 = vector.broadcast %6 : vector<1x16xi32> to vector<16x16xi32>
    %218 = vector.broadcast %5 : vector<16x1xi32> to vector<16x16xi32>
    %219 = arith.cmpi slt, %217, %218 : vector<16x16xi32>
    %220 = arith.andi %216, %219 : vector<16x16xi1>
    %221 = arith.ori %213, %220 : vector<16x16xi1>
    %cst_65 = arith.constant 1.000000e+00 : f32
    %cst_66 = arith.constant 0.000000e+00 : f32
    %222 = vector.broadcast %cst_65 : f32 to vector<16x16xf32>
    %223 = vector.broadcast %cst_66 : f32 to vector<16x16xf32>
    %224 = arith.select %221, %222, %223 : vector<16x16xi1>, vector<16x16xf32>
    %225 = arith.mulf %210, %224 : vector<16x16xf32>
    %cst_67 = arith.constant dense<0.000000e+00> : vector<16xf32>
    %226 = vector.multi_reduction <add>, %225, %cst_67 [1] : vector<16x16xf32> to vector<16xf32>
    %227 = vector.shape_cast %226 : vector<16xf32> to vector<16x1xf32>
    %cst_68 = arith.constant dense<0.000000e+00> : vector<16xf32>
    %228 = vector.multi_reduction <add>, %210, %cst_68 [1] : vector<16x16xf32> to vector<16xf32>
    %229 = vector.shape_cast %228 : vector<16xf32> to vector<16x1xf32>
    %cst_69 = arith.constant 5.000000e-01 : f32
    %230 = vector.broadcast %cst_69 : f32 to vector<16x1xf32>
    %231 = arith.mulf %230, %229 : vector<16x1xf32>
    %232 = math.ceil %231 : vector<16x1xf32>
    %233 = arith.cmpf olt, %227, %232 : vector<16x1xf32>
    %cst_70 = arith.constant 1.000000e+00 : f32
    %cst_71 = arith.constant 0.000000e+00 : f32
    %234 = vector.broadcast %cst_70 : f32 to vector<16x1xf32>
    %235 = vector.broadcast %cst_71 : f32 to vector<16x1xf32>
    %236 = arith.select %233, %234, %235 : vector<16x1xi1>, vector<16x1xf32>
    %237 = arith.mulf %99, %236 : vector<16x1xf32>
    %238 = vector.broadcast %237 : vector<16x1xf32> to vector<16x16xf32>
    %239 = arith.mulf %4, %238 : vector<16x16xf32>
    %cst_72 = arith.constant dense<0.000000e+00> : vector<16xf32>
    %240 = vector.multi_reduction <add>, %239, %cst_72 [0] : vector<16x16xf32> to vector<16xf32>
    %241 = vector.shape_cast %240 : vector<16xf32> to vector<1x16xf32>
    %242 = vector.broadcast %204 : vector<16x1xf32> to vector<16x32xf32>
    %243 = arith.mulf %192, %242 : vector<16x32xf32>
    %244 = vector.broadcast %237 : vector<16x1xf32> to vector<16x16xf32>
    %245 = arith.mulf %109, %244 : vector<16x16xf32>
    %246 = vector.broadcast %241 : vector<1x16xf32> to vector<16x16xf32>
    %247 = arith.mulf %245, %246 : vector<16x16xf32>
    %248 = vector.broadcast %237 : vector<16x1xf32> to vector<16x32xf32>
    %249 = arith.mulf %243, %248 : vector<16x32xf32>
    %cst_73 = arith.constant dense<0.000000e+00> : vector<2x32xf32>
    %250 = tpu.matmul %18, %249, %cst_73 {dimension_numbers = #tpu.dot_dimension_numbers<[1], [0], [0], [1], [0, 0, 1, 1], [], []>} : vector<2x16xf32>, vector<16x32xf32>, vector<2x32xf32> -> vector<2x32xf32>
    %251 = vector.broadcast %241 : vector<1x16xf32> to vector<2x16xf32>
    %252 = arith.mulf %18, %251 : vector<2x16xf32>
    %cst_74 = arith.constant dense<0.000000e+00> : vector<2xf32>
    %253 = vector.multi_reduction <add>, %252, %cst_74 [1] : vector<2x16xf32> to vector<2xf32>
    %254 = vector.shape_cast %253 : vector<2xf32> to vector<2x1xf32>
    %cst_75 = arith.constant 1.000000e+00 : f32
    %255 = vector.broadcast %cst_75 : f32 to vector<2x1xf32>
    %256 = arith.maximumf %254, %255 : vector<2x1xf32>
    %257 = vector.broadcast %256 : vector<2x1xf32> to vector<2x32xf32>
    %258 = arith.divf %250, %257 : vector<2x32xf32>
    %cst_76 = arith.constant 0.000000e+00 : f32
    %259 = vector.broadcast %cst_76 : f32 to vector<2x32xf32>
    %c0_i32_77 = arith.constant 0 : i32
    %260 = vector.broadcast %c0_i32_77 : i32 to vector<16x1xi32>
    %261 = arith.cmpi eq, %7, %260 : vector<16x1xi32>
    %cst_78 = arith.constant 0.000000e+00 : f32
    %262 = vector.broadcast %cst_78 : f32 to vector<16x1xf32>
    %263 = arith.select %261, %237, %262 : vector<16x1xi1>, vector<16x1xf32>
    %cst_79 = arith.constant 1.000000e+00 : f32
    %264 = vector.broadcast %cst_79 : f32 to vector<16x1xf32>
    %265 = arith.subf %263, %264 : vector<16x1xf32>
    %cst_80 = arith.constant 1.000000e+30 : f32
    %266 = vector.broadcast %cst_80 : f32 to vector<16x1xf32>
    %267 = arith.mulf %265, %266 : vector<16x1xf32>
    %268 = vector.broadcast %267 : vector<16x1xf32> to vector<16x32xf32>
    %269 = arith.addf %243, %268 : vector<16x32xf32>
    %cst_81 = arith.constant dense<0xFF800000> : vector<32xf32>
    %270 = vector.multi_reduction <maximumf>, %269, %cst_81 [0] : vector<16x32xf32> to vector<32xf32>
    %271 = vector.shape_cast %270 : vector<32xf32> to vector<1x32xf32>
    %c0_i32_82 = arith.constant 0 : i32
    %272 = vector.broadcast %c0_i32_82 : i32 to vector<2x1xi32>
    %273 = arith.cmpi eq, %19, %272 : vector<2x1xi32>
    %cst_83 = arith.constant 0.000000e+00 : f32
    %274 = vector.shape_cast %273 : vector<2x1xi1> to vector<2x1xi1>
    %275 = vector.broadcast %274 : vector<2x1xi1> to vector<2x32xi1>
    %276 = vector.shape_cast %271 : vector<1x32xf32> to vector<1x32xf32>
    %277 = vector.broadcast %276 : vector<1x32xf32> to vector<2x32xf32>
    %278 = vector.broadcast %cst_83 : f32 to vector<2x32xf32>
    %279 = arith.select %275, %277, %278 : vector<2x32xi1>, vector<2x32xf32>
    %280 = arith.addf %259, %279 : vector<2x32xf32>
    %c1_i32_84 = arith.constant 1 : i32
    %281 = vector.broadcast %c1_i32_84 : i32 to vector<16x1xi32>
    %282 = arith.cmpi eq, %7, %281 : vector<16x1xi32>
    %cst_85 = arith.constant 0.000000e+00 : f32
    %283 = vector.broadcast %cst_85 : f32 to vector<16x1xf32>
    %284 = arith.select %282, %237, %283 : vector<16x1xi1>, vector<16x1xf32>
    %cst_86 = arith.constant 1.000000e+00 : f32
    %285 = vector.broadcast %cst_86 : f32 to vector<16x1xf32>
    %286 = arith.subf %284, %285 : vector<16x1xf32>
    %cst_87 = arith.constant 1.000000e+30 : f32
    %287 = vector.broadcast %cst_87 : f32 to vector<16x1xf32>
    %288 = arith.mulf %286, %287 : vector<16x1xf32>
    %289 = vector.broadcast %288 : vector<16x1xf32> to vector<16x32xf32>
    %290 = arith.addf %243, %289 : vector<16x32xf32>
    %cst_88 = arith.constant dense<0xFF800000> : vector<32xf32>
    %291 = vector.multi_reduction <maximumf>, %290, %cst_88 [0] : vector<16x32xf32> to vector<32xf32>
    %292 = vector.shape_cast %291 : vector<32xf32> to vector<1x32xf32>
    %c1_i32_89 = arith.constant 1 : i32
    %293 = vector.broadcast %c1_i32_89 : i32 to vector<2x1xi32>
    %294 = arith.cmpi eq, %19, %293 : vector<2x1xi32>
    %cst_90 = arith.constant 0.000000e+00 : f32
    %295 = vector.shape_cast %294 : vector<2x1xi1> to vector<2x1xi1>
    %296 = vector.broadcast %295 : vector<2x1xi1> to vector<2x32xi1>
    %297 = vector.shape_cast %292 : vector<1x32xf32> to vector<1x32xf32>
    %298 = vector.broadcast %297 : vector<1x32xf32> to vector<2x32xf32>
    %299 = vector.broadcast %cst_90 : f32 to vector<2x32xf32>
    %300 = arith.select %296, %298, %299 : vector<2x32xi1>, vector<2x32xf32>
    %301 = arith.addf %280, %300 : vector<2x32xf32>
    %c0_91 = arith.constant 0 : index
    %c0_92 = arith.constant 0 : index
    %302 = vector.load %arg8[%c0_91, %c0_92] : memref<32x32xf32, #tpu.memory_space<vmem>>, vector<32x32xf32>
    %cst_93 = arith.constant dense<0.000000e+00> : vector<16x32xf32>
    %303 = tpu.matmul %243, %302, %cst_93 {dimension_numbers = #tpu.dot_dimension_numbers<[1], [0], [0], [1], [0, 0, 1, 1], [], []>} : vector<16x32xf32>, vector<32x32xf32>, vector<16x32xf32> -> vector<16x32xf32>
    %c0_94 = arith.constant 0 : index
    %c0_95 = arith.constant 0 : index
    %304 = vector.load %arg9[%c0_94, %c0_95] : memref<1x32xf32, #tpu.memory_space<vmem>>, vector<1x32xf32>
    %305 = vector.broadcast %237 : vector<16x1xf32> to vector<16x16xf32>
    %306 = arith.mulf %4, %305 : vector<16x16xf32>
    %307 = arith.addf %247, %306 : vector<16x16xf32>
    %cst_96 = arith.constant dense<0.000000e+00> : vector<16xf32>
    %308 = vector.multi_reduction <add>, %307, %cst_96 [1] : vector<16x16xf32> to vector<16xf32>
    %309 = vector.shape_cast %308 : vector<16xf32> to vector<16x1xf32>
    %cst_97 = arith.constant 0.000000e+00 : f32
    %310 = vector.broadcast %cst_97 : f32 to vector<16x1xf32>
    %311 = arith.cmpf ogt, %309, %310 : vector<16x1xf32>
    %312 = math.rsqrt %309 : vector<16x1xf32>
    %cst_98 = arith.constant 0.000000e+00 : f32
    %313 = vector.broadcast %cst_98 : f32 to vector<16x1xf32>
    %314 = arith.select %311, %312, %313 : vector<16x1xi1>, vector<16x1xf32>
    %315 = vector.broadcast %314 : vector<16x1xf32> to vector<16x16xf32>
    %316 = arith.mulf %315, %307 : vector<16x16xf32>
    %317 = vector.broadcast %314 : vector<16x1xf32> to vector<16x16xf32>
    %318 = arith.mulf %4, %317 : vector<16x16xf32>
    %cst_99 = arith.constant dense<0.000000e+00> : vector<16xf32>
    %319 = vector.multi_reduction <add>, %318, %cst_99 [0] : vector<16x16xf32> to vector<16xf32>
    %320 = vector.shape_cast %319 : vector<16xf32> to vector<1x16xf32>
    %321 = vector.broadcast %320 : vector<1x16xf32> to vector<16x16xf32>
    %322 = arith.mulf %316, %321 : vector<16x16xf32>
    %cst_100 = arith.constant dense<0.000000e+00> : vector<16x32xf32>
    %323 = tpu.matmul %322, %303, %cst_100 {dimension_numbers = #tpu.dot_dimension_numbers<[1], [0], [0], [1], [0, 0, 1, 1], [], []>} : vector<16x16xf32>, vector<16x32xf32>, vector<16x32xf32> -> vector<16x32xf32>
    %324 = vector.broadcast %304 : vector<1x32xf32> to vector<16x32xf32>
    %325 = arith.addf %323, %324 : vector<16x32xf32>
    %cst_101 = arith.constant 0.000000e+00 : f32
    %326 = vector.broadcast %cst_101 : f32 to vector<16x32xf32>
    %327 = arith.cmpf ogt, %325, %326 : vector<16x32xf32>
    %cst_102 = arith.constant 1.000000e-01 : f32
    %328 = vector.broadcast %cst_102 : f32 to vector<16x32xf32>
    %329 = arith.mulf %328, %325 : vector<16x32xf32>
    %330 = arith.select %327, %325, %329 : vector<16x32xi1>, vector<16x32xf32>
    %c0_103 = arith.constant 0 : index
    %c0_104 = arith.constant 0 : index
    %331 = vector.load %arg12[%c0_103, %c0_104] : memref<1x32xf32, #tpu.memory_space<vmem>>, vector<1x32xf32>
    %332 = arith.mulf %331, %331 : vector<1x32xf32>
    %cst_105 = arith.constant dense<0.000000e+00> : vector<1xf32>
    %333 = vector.multi_reduction <add>, %332, %cst_105 [1] : vector<1x32xf32> to vector<1xf32>
    %334 = vector.shape_cast %333 : vector<1xf32> to vector<1x1xf32>
    %335 = math.rsqrt %334 : vector<1x1xf32>
    %336 = vector.broadcast %331 : vector<1x32xf32> to vector<16x32xf32>
    %337 = arith.mulf %330, %336 : vector<16x32xf32>
    %cst_106 = arith.constant dense<0.000000e+00> : vector<16xf32>
    %338 = vector.multi_reduction <add>, %337, %cst_106 [1] : vector<16x32xf32> to vector<16xf32>
    %339 = vector.shape_cast %338 : vector<16xf32> to vector<16x1xf32>
    %340 = vector.broadcast %335 : vector<1x1xf32> to vector<16x1xf32>
    %341 = arith.mulf %339, %340 : vector<16x1xf32>
    %342 = math.tanh %341 : vector<16x1xf32>
    %343 = vector.broadcast %342 : vector<16x1xf32> to vector<16x16xf32>
    %344 = arith.mulf %4, %343 : vector<16x16xf32>
    %cst_107 = arith.constant dense<0.000000e+00> : vector<16xf32>
    %345 = vector.multi_reduction <add>, %344, %cst_107 [0] : vector<16x16xf32> to vector<16xf32>
    %346 = vector.shape_cast %345 : vector<16xf32> to vector<1x16xf32>
    %347 = vector.broadcast %241 : vector<1x16xf32> to vector<16x16xf32>
    %348 = arith.mulf %13, %347 : vector<16x16xf32>
    %349 = vector.broadcast %346 : vector<1x16xf32> to vector<16x16xf32>
    %350 = vector.broadcast %342 : vector<16x1xf32> to vector<16x16xf32>
    %351 = arith.cmpf ogt, %349, %350 : vector<16x16xf32>
    %352 = vector.broadcast %346 : vector<1x16xf32> to vector<16x16xf32>
    %353 = vector.broadcast %342 : vector<16x1xf32> to vector<16x16xf32>
    %354 = arith.cmpf oeq, %352, %353 : vector<16x16xf32>
    %355 = vector.broadcast %6 : vector<1x16xi32> to vector<16x16xi32>
    %356 = vector.broadcast %5 : vector<16x1xi32> to vector<16x16xi32>
    %357 = arith.cmpi slt, %355, %356 : vector<16x16xi32>
    %358 = arith.andi %354, %357 : vector<16x16xi1>
    %359 = arith.ori %351, %358 : vector<16x16xi1>
    %cst_108 = arith.constant 1.000000e+00 : f32
    %cst_109 = arith.constant 0.000000e+00 : f32
    %360 = vector.broadcast %cst_108 : f32 to vector<16x16xf32>
    %361 = vector.broadcast %cst_109 : f32 to vector<16x16xf32>
    %362 = arith.select %359, %360, %361 : vector<16x16xi1>, vector<16x16xf32>
    %363 = arith.mulf %348, %362 : vector<16x16xf32>
    %cst_110 = arith.constant dense<0.000000e+00> : vector<16xf32>
    %364 = vector.multi_reduction <add>, %363, %cst_110 [1] : vector<16x16xf32> to vector<16xf32>
    %365 = vector.shape_cast %364 : vector<16xf32> to vector<16x1xf32>
    %cst_111 = arith.constant dense<0.000000e+00> : vector<16xf32>
    %366 = vector.multi_reduction <add>, %348, %cst_111 [1] : vector<16x16xf32> to vector<16xf32>
    %367 = vector.shape_cast %366 : vector<16xf32> to vector<16x1xf32>
    %cst_112 = arith.constant 5.000000e-01 : f32
    %368 = vector.broadcast %cst_112 : f32 to vector<16x1xf32>
    %369 = arith.mulf %368, %367 : vector<16x1xf32>
    %370 = math.ceil %369 : vector<16x1xf32>
    %371 = arith.cmpf olt, %365, %370 : vector<16x1xf32>
    %cst_113 = arith.constant 1.000000e+00 : f32
    %cst_114 = arith.constant 0.000000e+00 : f32
    %372 = vector.broadcast %cst_113 : f32 to vector<16x1xf32>
    %373 = vector.broadcast %cst_114 : f32 to vector<16x1xf32>
    %374 = arith.select %371, %372, %373 : vector<16x1xi1>, vector<16x1xf32>
    %375 = arith.mulf %237, %374 : vector<16x1xf32>
    %376 = vector.broadcast %375 : vector<16x1xf32> to vector<16x16xf32>
    %377 = arith.mulf %4, %376 : vector<16x16xf32>
    %cst_115 = arith.constant dense<0.000000e+00> : vector<16xf32>
    %378 = vector.multi_reduction <add>, %377, %cst_115 [0] : vector<16x16xf32> to vector<16xf32>
    %379 = vector.shape_cast %378 : vector<16xf32> to vector<1x16xf32>
    %380 = vector.broadcast %342 : vector<16x1xf32> to vector<16x32xf32>
    %381 = arith.mulf %330, %380 : vector<16x32xf32>
    %382 = vector.broadcast %375 : vector<16x1xf32> to vector<16x16xf32>
    %383 = arith.mulf %247, %382 : vector<16x16xf32>
    %384 = vector.broadcast %379 : vector<1x16xf32> to vector<16x16xf32>
    %385 = arith.mulf %383, %384 : vector<16x16xf32>
    %cst_116 = arith.constant dense<0.000000e+00> : vector<16xf32>
    %386 = vector.multi_reduction <add>, %385, %cst_116 [1] : vector<16x16xf32> to vector<16xf32>
    %387 = vector.shape_cast %386 : vector<16xf32> to vector<16x1xf32>
    %cst_117 = arith.constant 0.000000e+00 : f32
    %388 = vector.broadcast %cst_117 : f32 to vector<16x1xf32>
    %389 = arith.cmpf ogt, %387, %388 : vector<16x1xf32>
    %390 = math.rsqrt %387 : vector<16x1xf32>
    %cst_118 = arith.constant 0.000000e+00 : f32
    %391 = vector.broadcast %cst_118 : f32 to vector<16x1xf32>
    %392 = arith.select %389, %390, %391 : vector<16x1xi1>, vector<16x1xf32>
    %393 = vector.broadcast %375 : vector<16x1xf32> to vector<16x16xf32>
    %394 = arith.mulf %4, %393 : vector<16x16xf32>
    %395 = vector.broadcast %392 : vector<16x1xf32> to vector<16x16xf32>
    %396 = arith.mulf %395, %385 : vector<16x16xf32>
    %397 = vector.broadcast %392 : vector<16x1xf32> to vector<16x16xf32>
    %398 = arith.mulf %4, %397 : vector<16x16xf32>
    %cst_119 = arith.constant dense<0.000000e+00> : vector<16xf32>
    %399 = vector.multi_reduction <add>, %398, %cst_119 [0] : vector<16x16xf32> to vector<16xf32>
    %400 = vector.shape_cast %399 : vector<16xf32> to vector<1x16xf32>
    %401 = vector.broadcast %400 : vector<1x16xf32> to vector<16x16xf32>
    %402 = arith.mulf %396, %401 : vector<16x16xf32>
    %403 = arith.subf %394, %402 : vector<16x16xf32>
    %cst_120 = arith.constant dense<0.000000e+00> : vector<16x32xf32>
    %404 = tpu.matmul %403, %381, %cst_120 {dimension_numbers = #tpu.dot_dimension_numbers<[1], [0], [0], [1], [0, 0, 1, 1], [], []>} : vector<16x16xf32>, vector<16x32xf32>, vector<16x32xf32> -> vector<16x32xf32>
    %405 = math.absf %404 : vector<16x32xf32>
    %cst_121 = arith.constant dense<0.000000e+00> : vector<16xf32>
    %406 = vector.multi_reduction <add>, %405, %cst_121 [1] : vector<16x32xf32> to vector<16xf32>
    %407 = vector.shape_cast %406 : vector<16xf32> to vector<16x1xf32>
    %cst_122 = arith.constant dense<0.000000e+00> : vector<1xf32>
    %408 = vector.multi_reduction <add>, %375, %cst_122 [0] : vector<16x1xf32> to vector<1xf32>
    %409 = vector.shape_cast %408 : vector<1xf32> to vector<1x1xf32>
    %cst_123 = arith.constant 1.000000e+00 : f32
    %410 = vector.broadcast %cst_123 : f32 to vector<1x1xf32>
    %411 = arith.maximumf %409, %410 : vector<1x1xf32>
    %412 = arith.mulf %407, %375 : vector<16x1xf32>
    %cst_124 = arith.constant dense<0.000000e+00> : vector<1xf32>
    %413 = vector.multi_reduction <add>, %412, %cst_124 [0] : vector<16x1xf32> to vector<1xf32>
    %414 = vector.shape_cast %413 : vector<1xf32> to vector<1x1xf32>
    %415 = arith.divf %414, %411 : vector<1x1xf32>
    %c0_125 = arith.constant 0 : index
    %c0_126 = arith.constant 0 : index
    %416 = vector.load %arg20[%c0_125, %c0_126] : memref<1x1xf32, #tpu.memory_space<vmem>>, vector<1x1xf32>
    tpu.vector_store %arg20[%c0_125, %c0_126], %415 {strides = array<i32>} : memref<1x1xf32, #tpu.memory_space<vmem>>, vector<1x1xf32>,
    %417 = vector.broadcast %375 : vector<16x1xf32> to vector<16x32xf32>
    %418 = arith.mulf %381, %417 : vector<16x32xf32>
    %cst_127 = arith.constant dense<0.000000e+00> : vector<2x32xf32>
    %419 = tpu.matmul %18, %418, %cst_127 {dimension_numbers = #tpu.dot_dimension_numbers<[1], [0], [0], [1], [0, 0, 1, 1], [], []>} : vector<2x16xf32>, vector<16x32xf32>, vector<2x32xf32> -> vector<2x32xf32>
    %420 = vector.broadcast %379 : vector<1x16xf32> to vector<2x16xf32>
    %421 = arith.mulf %18, %420 : vector<2x16xf32>
    %cst_128 = arith.constant dense<0.000000e+00> : vector<2xf32>
    %422 = vector.multi_reduction <add>, %421, %cst_128 [1] : vector<2x16xf32> to vector<2xf32>
    %423 = vector.shape_cast %422 : vector<2xf32> to vector<2x1xf32>
    %cst_129 = arith.constant 1.000000e+00 : f32
    %424 = vector.broadcast %cst_129 : f32 to vector<2x1xf32>
    %425 = arith.maximumf %423, %424 : vector<2x1xf32>
    %426 = vector.broadcast %425 : vector<2x1xf32> to vector<2x32xf32>
    %427 = arith.divf %419, %426 : vector<2x32xf32>
    %cst_130 = arith.constant 0.000000e+00 : f32
    %428 = vector.broadcast %cst_130 : f32 to vector<2x32xf32>
    %c0_i32_131 = arith.constant 0 : i32
    %429 = vector.broadcast %c0_i32_131 : i32 to vector<16x1xi32>
    %430 = arith.cmpi eq, %7, %429 : vector<16x1xi32>
    %cst_132 = arith.constant 0.000000e+00 : f32
    %431 = vector.broadcast %cst_132 : f32 to vector<16x1xf32>
    %432 = arith.select %430, %375, %431 : vector<16x1xi1>, vector<16x1xf32>
    %cst_133 = arith.constant 1.000000e+00 : f32
    %433 = vector.broadcast %cst_133 : f32 to vector<16x1xf32>
    %434 = arith.subf %432, %433 : vector<16x1xf32>
    %cst_134 = arith.constant 1.000000e+30 : f32
    %435 = vector.broadcast %cst_134 : f32 to vector<16x1xf32>
    %436 = arith.mulf %434, %435 : vector<16x1xf32>
    %437 = vector.broadcast %436 : vector<16x1xf32> to vector<16x32xf32>
    %438 = arith.addf %381, %437 : vector<16x32xf32>
    %cst_135 = arith.constant dense<0xFF800000> : vector<32xf32>
    %439 = vector.multi_reduction <maximumf>, %438, %cst_135 [0] : vector<16x32xf32> to vector<32xf32>
    %440 = vector.shape_cast %439 : vector<32xf32> to vector<1x32xf32>
    %c0_i32_136 = arith.constant 0 : i32
    %441 = vector.broadcast %c0_i32_136 : i32 to vector<2x1xi32>
    %442 = arith.cmpi eq, %19, %441 : vector<2x1xi32>
    %cst_137 = arith.constant 0.000000e+00 : f32
    %443 = vector.shape_cast %442 : vector<2x1xi1> to vector<2x1xi1>
    %444 = vector.broadcast %443 : vector<2x1xi1> to vector<2x32xi1>
    %445 = vector.shape_cast %440 : vector<1x32xf32> to vector<1x32xf32>
    %446 = vector.broadcast %445 : vector<1x32xf32> to vector<2x32xf32>
    %447 = vector.broadcast %cst_137 : f32 to vector<2x32xf32>
    %448 = arith.select %444, %446, %447 : vector<2x32xi1>, vector<2x32xf32>
    %449 = arith.addf %428, %448 : vector<2x32xf32>
    %c1_i32_138 = arith.constant 1 : i32
    %450 = vector.broadcast %c1_i32_138 : i32 to vector<16x1xi32>
    %451 = arith.cmpi eq, %7, %450 : vector<16x1xi32>
    %cst_139 = arith.constant 0.000000e+00 : f32
    %452 = vector.broadcast %cst_139 : f32 to vector<16x1xf32>
    %453 = arith.select %451, %375, %452 : vector<16x1xi1>, vector<16x1xf32>
    %cst_140 = arith.constant 1.000000e+00 : f32
    %454 = vector.broadcast %cst_140 : f32 to vector<16x1xf32>
    %455 = arith.subf %453, %454 : vector<16x1xf32>
    %cst_141 = arith.constant 1.000000e+30 : f32
    %456 = vector.broadcast %cst_141 : f32 to vector<16x1xf32>
    %457 = arith.mulf %455, %456 : vector<16x1xf32>
    %458 = vector.broadcast %457 : vector<16x1xf32> to vector<16x32xf32>
    %459 = arith.addf %381, %458 : vector<16x32xf32>
    %cst_142 = arith.constant dense<0xFF800000> : vector<32xf32>
    %460 = vector.multi_reduction <maximumf>, %459, %cst_142 [0] : vector<16x32xf32> to vector<32xf32>
    %461 = vector.shape_cast %460 : vector<32xf32> to vector<1x32xf32>
    %c1_i32_143 = arith.constant 1 : i32
    %462 = vector.broadcast %c1_i32_143 : i32 to vector<2x1xi32>
    %463 = arith.cmpi eq, %19, %462 : vector<2x1xi32>
    %cst_144 = arith.constant 0.000000e+00 : f32
    %464 = vector.shape_cast %463 : vector<2x1xi1> to vector<2x1xi1>
    %465 = vector.broadcast %464 : vector<2x1xi1> to vector<2x32xi1>
    %466 = vector.shape_cast %461 : vector<1x32xf32> to vector<1x32xf32>
    %467 = vector.broadcast %466 : vector<1x32xf32> to vector<2x32xf32>
    %468 = vector.broadcast %cst_144 : f32 to vector<2x32xf32>
    %469 = arith.select %465, %467, %468 : vector<2x32xi1>, vector<2x32xf32>
    %470 = arith.addf %449, %469 : vector<2x32xf32>
    %cst_145 = arith.constant 0.000000e+00 : f32
    %471 = vector.broadcast %cst_145 : f32 to vector<2x32xf32>
    %472 = arith.cmpf ogt, %163, %471 : vector<2x32xf32>
    %cst_146 = arith.constant 1.000000e-01 : f32
    %473 = vector.broadcast %cst_146 : f32 to vector<2x32xf32>
    %474 = arith.mulf %473, %163 : vector<2x32xf32>
    %475 = arith.select %472, %163, %474 : vector<2x32xi1>, vector<2x32xf32>
    %cst_147 = arith.constant 0.000000e+00 : f32
    %476 = vector.broadcast %cst_147 : f32 to vector<2x32xf32>
    %477 = arith.cmpf ogt, %301, %476 : vector<2x32xf32>
    %cst_148 = arith.constant 1.000000e-01 : f32
    %478 = vector.broadcast %cst_148 : f32 to vector<2x32xf32>
    %479 = arith.mulf %478, %301 : vector<2x32xf32>
    %480 = arith.select %477, %301, %479 : vector<2x32xi1>, vector<2x32xf32>
    %481 = arith.addf %475, %480 : vector<2x32xf32>
    %cst_149 = arith.constant 0.000000e+00 : f32
    %482 = vector.broadcast %cst_149 : f32 to vector<2x32xf32>
    %483 = arith.cmpf ogt, %470, %482 : vector<2x32xf32>
    %cst_150 = arith.constant 1.000000e-01 : f32
    %484 = vector.broadcast %cst_150 : f32 to vector<2x32xf32>
    %485 = arith.mulf %484, %470 : vector<2x32xf32>
    %486 = arith.select %483, %470, %485 : vector<2x32xi1>, vector<2x32xf32>
    %487 = arith.addf %481, %486 : vector<2x32xf32>
    %cst_151 = arith.constant 0.000000e+00 : f32
    %488 = vector.broadcast %cst_151 : f32 to vector<2x32xf32>
    %489 = arith.cmpf ogt, %120, %488 : vector<2x32xf32>
    %cst_152 = arith.constant 1.000000e-01 : f32
    %490 = vector.broadcast %cst_152 : f32 to vector<2x32xf32>
    %491 = arith.mulf %490, %120 : vector<2x32xf32>
    %492 = arith.select %489, %120, %491 : vector<2x32xi1>, vector<2x32xf32>
    %cst_153 = arith.constant 0.000000e+00 : f32
    %493 = vector.broadcast %cst_153 : f32 to vector<2x32xf32>
    %494 = arith.cmpf ogt, %258, %493 : vector<2x32xf32>
    %cst_154 = arith.constant 1.000000e-01 : f32
    %495 = vector.broadcast %cst_154 : f32 to vector<2x32xf32>
    %496 = arith.mulf %495, %258 : vector<2x32xf32>
    %497 = arith.select %494, %258, %496 : vector<2x32xi1>, vector<2x32xf32>
    %498 = arith.addf %492, %497 : vector<2x32xf32>
    %cst_155 = arith.constant 0.000000e+00 : f32
    %499 = vector.broadcast %cst_155 : f32 to vector<2x32xf32>
    %500 = arith.cmpf ogt, %427, %499 : vector<2x32xf32>
    %cst_156 = arith.constant 1.000000e-01 : f32
    %501 = vector.broadcast %cst_156 : f32 to vector<2x32xf32>
    %502 = arith.mulf %501, %427 : vector<2x32xf32>
    %503 = arith.select %500, %427, %502 : vector<2x32xi1>, vector<2x32xf32>
    %504 = arith.addf %498, %503 : vector<2x32xf32>
    %c0_157 = arith.constant 0 : index
    %c0_158 = arith.constant 0 : index
    %505 = vector.load %arg13[%c0_157, %c0_158] : memref<64x32xf32, #tpu.memory_space<vmem>>, vector<64x32xf32>
    %506 = vector.extract_strided_slice %505 {offsets = [0, 0], sizes = [32, 32], strides = [1, 1]} : vector<64x32xf32> to vector<32x32xf32>
    %cst_159 = arith.constant dense<0.000000e+00> : vector<2x32xf32>
    %507 = tpu.matmul %487, %506, %cst_159 {dimension_numbers = #tpu.dot_dimension_numbers<[1], [0], [0], [1], [0, 0, 1, 1], [], []>} : vector<2x32xf32>, vector<32x32xf32>, vector<2x32xf32> -> vector<2x32xf32>
    %508 = vector.extract_strided_slice %505 {offsets = [32, 0], sizes = [32, 32], strides = [1, 1]} : vector<64x32xf32> to vector<32x32xf32>
    %cst_160 = arith.constant dense<0.000000e+00> : vector<2x32xf32>
    %509 = tpu.matmul %504, %508, %cst_160 {dimension_numbers = #tpu.dot_dimension_numbers<[1], [0], [0], [1], [0, 0, 1, 1], [], []>} : vector<2x32xf32>, vector<32x32xf32>, vector<2x32xf32> -> vector<2x32xf32>
    %510 = arith.addf %507, %509 : vector<2x32xf32>
    %c0_161 = arith.constant 0 : index
    %c0_162 = arith.constant 0 : index
    %511 = vector.load %arg14[%c0_161, %c0_162] : memref<1x32xf32, #tpu.memory_space<vmem>>, vector<1x32xf32>
    %512 = vector.broadcast %511 : vector<1x32xf32> to vector<2x32xf32>
    %513 = arith.addf %510, %512 : vector<2x32xf32>
    %cst_163 = arith.constant 0.000000e+00 : f32
    %514 = vector.broadcast %cst_163 : f32 to vector<2x32xf32>
    %515 = arith.cmpf ogt, %513, %514 : vector<2x32xf32>
    %cst_164 = arith.constant 1.000000e-01 : f32
    %516 = vector.broadcast %cst_164 : f32 to vector<2x32xf32>
    %517 = arith.mulf %516, %513 : vector<2x32xf32>
    %518 = arith.select %515, %513, %517 : vector<2x32xi1>, vector<2x32xf32>
    %c0_165 = arith.constant 0 : index
    %c0_166 = arith.constant 0 : index
    %519 = vector.load %arg15[%c0_165, %c0_166] : memref<32x16xf32, #tpu.memory_space<vmem>>, vector<32x16xf32>
    %cst_167 = arith.constant dense<0.000000e+00> : vector<2x16xf32>
    %520 = tpu.matmul %518, %519, %cst_167 {dimension_numbers = #tpu.dot_dimension_numbers<[1], [0], [0], [1], [0, 0, 1, 1], [], []>} : vector<2x32xf32>, vector<32x16xf32>, vector<2x16xf32> -> vector<2x16xf32>
    %c0_168 = arith.constant 0 : index
    %c0_169 = arith.constant 0 : index
    %521 = vector.load %arg16[%c0_168, %c0_169] : memref<1x16xf32, #tpu.memory_space<vmem>>, vector<1x16xf32>
    %522 = vector.broadcast %521 : vector<1x16xf32> to vector<2x16xf32>
    %523 = arith.addf %520, %522 : vector<2x16xf32>
    %cst_170 = arith.constant 0.000000e+00 : f32
    %524 = vector.broadcast %cst_170 : f32 to vector<2x16xf32>
    %525 = arith.cmpf ogt, %523, %524 : vector<2x16xf32>
    %cst_171 = arith.constant 1.000000e-01 : f32
    %526 = vector.broadcast %cst_171 : f32 to vector<2x16xf32>
    %527 = arith.mulf %526, %523 : vector<2x16xf32>
    %528 = arith.select %525, %523, %527 : vector<2x16xi1>, vector<2x16xf32>
    %c0_172 = arith.constant 0 : index
    %c0_173 = arith.constant 0 : index
    %529 = vector.load %arg17[%c0_172, %c0_173] : memref<16x30xf32, #tpu.memory_space<vmem>>, vector<16x30xf32>
    %cst_174 = arith.constant dense<0.000000e+00> : vector<2x30xf32>
    %530 = tpu.matmul %528, %529, %cst_174 {dimension_numbers = #tpu.dot_dimension_numbers<[1], [0], [0], [1], [0, 0, 1, 1], [], []>} : vector<2x16xf32>, vector<16x30xf32>, vector<2x30xf32> -> vector<2x30xf32>
    %c0_175 = arith.constant 0 : index
    %c0_176 = arith.constant 0 : index
    %531 = vector.load %arg18[%c0_175, %c0_176] : memref<1x30xf32, #tpu.memory_space<vmem>>, vector<1x30xf32>
    %532 = vector.broadcast %531 : vector<1x30xf32> to vector<2x30xf32>
    %533 = arith.addf %530, %532 : vector<2x30xf32>
    %c0_177 = arith.constant 0 : index
    %c0_178 = arith.constant 0 : index
    %534 = vector.load %arg19[%c0_177, %c0_178] : memref<2x30xf32, #tpu.memory_space<vmem>>, vector<2x30xf32>
    tpu.vector_store %arg19[%c0_177, %c0_178], %533 {strides = array<i32>} : memref<2x30xf32, #tpu.memory_space<vmem>>, vector<2x30xf32>,
    return
  }
}

</mosaic_0001>

<bundles_post_ra>
// kernel: tpu_custom_call.1
= control target key start
LH: loop header
LB: loop body
LE: loop exit
PB: predicated region body
PF: predicated region fallthrough
CT: control target
= control target key end

     0   :  { %s2927_s0 = inlined_call_operand.vmem [shape: f32[16,1], index: 0, kind: input, shape index: {}]   ;;  %s2928_s1 = inlined_call_operand.vmem [shape: f32[16,16], index: 1, kind: input, shape index: {}]   ;;  %s2929_s2 = inlined_call_operand.vmem [shape: s32[16,1], index: 2, kind: input, shape index: {}]   ;;  %s2930_s3 = inlined_call_operand.vmem [shape: s32[1,16], index: 3, kind: input, shape index: {}]   ;;  %s2931_s4 = inlined_call_operand.vmem [shape: f32[1,32], index: 4, kind: input, shape index: {}]   ;;  %s2932_s5 = inlined_call_operand.vmem [shape: f32[1,32], index: 5, kind: input, shape index: {}]   ;;  %s2933_s6 = inlined_call_operand.vmem [shape: f32[32,32], index: 6, kind: input, shape index: {}]   ;;  %s2934_s7 = inlined_call_operand.vmem [shape: f32[1,32], index: 7, kind: input, shape index: {}]   ;;  %s2935_s8 = inlined_call_operand.vmem [shape: f32[32,32], index: 8, kind: input, shape index: {}]   ;;  %s2936_s9 = inlined_call_operand.vmem [shape: f32[1,32], index: 9, kind: input, shape index: {}]   ;;  %s2937_s10 = inlined_call_operand.vmem [shape: f32[1,32], index: 10, kind: input, shape index: {}]   ;;  %s2938_s11 = inlined_call_operand.vmem [shape: f32[1,32], index: 11, kind: input, shape index: {}]   ;;  %s2939_s12 = inlined_call_operand.vmem [shape: f32[1,32], index: 12, kind: input, shape index: {}]   ;;  %s2940_s13 = inlined_call_operand.vmem [shape: f32[64,32], index: 13, kind: input, shape index: {}]   ;;  %s2941_s14 = inlined_call_operand.vmem [shape: f32[1,32], index: 14, kind: input, shape index: {}]   ;;  %s2942_s15 = inlined_call_operand.vmem [shape: f32[32,16], index: 15, kind: input, shape index: {}]   ;;  %s2943_s16 = inlined_call_operand.vmem [shape: f32[1,16], index: 16, kind: input, shape index: {}]   ;;  %s2944_s17 = inlined_call_operand.vmem [shape: f32[16,30], index: 17, kind: input, shape index: {}]   ;;  %s2945_s18 = inlined_call_operand.vmem [shape: f32[1,30], index: 18, kind: input, shape index: {}]   ;;  %s2946_s19 = inlined_call_operand.hbm [shape: f32[2,30], index: 19, kind: output, shape index: {0}]   ;;  %s2947_s20 = inlined_call_operand.hbm [shape: f32[1,1], index: 20, kind: output, shape index: {1}]  }
   0x1   :  { %2951 = sst [smem:[#allocation8_spill]] %s2927_s0 }
   0x2   :  { %2952 = sst [smem:[#allocation9_spill]] %s2928_s1 }
   0x3   :  { %2953 = sst [smem:[#allocation10_spill]] %s2929_s2 }
   0x4   :  { %2954 = sst [smem:[#allocation11_spill]] %s2930_s3 }
   0x5   :  { %2955 = sst [smem:[#allocation12_spill]] %s2931_s4 }
   0x6   :  { %26 = vsyncpa [#allocation3], 0  ;;  %v66_v0 = vlaneseq  ;;  %s2956_s23 = sld [smem:[#allocation8_spill]]  ;;  %v2258_v2 = vmov 0  }
   0x7   :  { %2166 = vset.pattern.permute.xlu1 %v2258_v2  ;;  %2167 = vset.pattern.permute.xlu0 %v2258_v2 }
   0xc   :  { %v101_v1 = vld [vmem:[%s2956_s23] sm:$0xff] }
   0xd   :  { %27 = vsyncpa [#allocation5], 0  ;;  %v2372_v3 = vshrl.u32 %v66_v0, 7  ;;  %v2374_v4 = vand.u32 127, %v66_v0  ;;  %106 = vperm.xlu1 %2166, %v101_v1   ;;  %s2957_s25 = sld [smem:[#allocation9_spill]]  ;;  %v102_v6 = vld [vmem:[%s2956_s23 + $0x8] sm:$0xff] }
   0xe   :  { %v2259_v8 = vmov 0.0   ;;  %vm125_vm1 = vcmask 130048   ;;  %v246_v16 = vld [vmem:[%s2937_s10] sm:$0x1]  ;;  %vm248_vm3 = vcmask 253952   ;;  %s2958_s21 = sld [smem:[#allocation12_spill]] }
   0xf   :  { %vm71_vm0 = vcmp.eq.s32.totalorder %v2372_v3, %v2374_v4  ;;  %v2387_v7 = vadd.s32 8, %v2372_v3  ;;  %v247_v17 = vmul.f32 %v246_v16, %v246_v16  ;;  %v1895_v46 = vld [vmem:[%s2932_s5] ss:$0 sm:$0xff]  ;;  %v2425_v47 = vsub.s32 0, %v2372_v3  ;;  %s2959_s23 = sld [smem:[#allocation10_spill]]  ;;  %v490_v0 = vld [vmem:[%s2933_s6 + $0x8] sm:$0xff] }
  0x10   :  { %v2390_v9 = vsel %vm71_vm0, 1.0, %v2259_v8  ;;  %vm261_vm8 = vcmask 261120   ;;  %v489_v63 = vld [vmem:[%s2933_s6] sm:$0xff]  ;;  %v491_v2 = vld [vmem:[%s2933_s6 + $0x10] sm:$0xff]  ;;  %s2960_s10 = sld [smem:[#allocation11_spill]]  ;;  %vm291_vm11 = vcmp.lt.s32.totalorder %v2374_v4, %v2372_v3 }
  0x11   :  { %vm72_vm2 = vcmp.eq.s32.totalorder %v2387_v7, %v2374_v4  ;;  %111 = vperm.xlu1 %2166, %v102_v6   ;;  %v249_v18 = vsel %vm248_vm3, %v247_v17, 0.0  ;;  %v257_v52 = vrot.slane %v246_v16, %v2425_v47  ;;  %v2105_v1 = vpack.c.bf16 %v490_v0, %v489_v63  ;;  %v492_v6 = vld [vmem:[%s2933_s6 + $0x18] sm:$0xff] }
  0x12   :  { %v2402_v12 = vsel %vm72_vm2, 1.0, %v2259_v8  ;;  %vm292_vm15 = vcmp.lt.s32.totalorder %v2374_v4, %v2387_v7 }
  0x13   :  { %v2379_v5 = vld [vmem:[%s2957_s25] sm:$0xff]  ;;  %v2395_v10 = vld [vmem:[%s2957_s25 + $0x8] sm:$0xff] }
  0x14   :  { %v123_v11 = vadd.f32 %v2390_v9, %v2379_v5  ;;  %v124_v14 = vadd.f32 %v2402_v12, %v2395_v10  ;;  %v1894_v19 = vld [vmem:[%s2958_s21] ss:$0 sm:$0xff]  ;;  %s2262_s21 = smov [#allocation4]  }
  0x15   :  { %v2433_v61 = vld [vmem:[%s2959_s23 + $0x8] sm:$0xff]  ;;  %v2439_v62 = vld [vmem:[%s2959_s23] sm:$0xff] }
  0x16   :  { %v126_v13 = vsel %vm125_vm1, %v123_v11, 0.0  ;;  %v129_v15 = vsel %vm125_vm1, %v124_v14, 0.0 }
  0x17   :  { %127 = vadd.xlane.f32.xlu0 %v126_v13 }
  0x1b   :  { %130 = vadd.xlane.f32.xlu0 %v129_v15 }
  0x1f   :  { %250 = vadd.xlane.f32.xlu0 %v249_v18 }
  0x8c   :  { %v107_v20 = vpop.permute.xlu1 %106 }
  0x8d   :  { %v120_v21 = vmul.f32 %v1894_v19, %v107_v20  ;;  %v2458_v20 = vld [vmem:[%s2960_s10] ss:$0 sm:$0xff]  ;;  %s1876_s10 = sshll.u32 %s2262_s21, 4  ;;  %s1877_s10 = int_to_ptr.vmem [resolvable:$true] %s1876_s10 }
  0x8e   :  { %s2210_s6 = scalar_lea.vmem %s1877_s10, 16  ;;  %s2214_s1 = scalar_lea.vmem %s1877_s10, 32 }
  0x8f   :  { %p2211_p0 = scmp.ne.s32.totalorder %s1877_s10, %s2210_s6  ;;  %p2215_p1 = scmp.lt.s32.totalorder %s1877_s10, %s1877_s10 }
  0x90   :  { %v112_v22 = vpop.permute.xlu1 %111  ;;  %p2216_p2 = scmp.lt.s32.totalorder %s2214_s1, %s2210_s6 }
  0x91   :  { %v121_v23 = vmul.f32 %v1894_v19, %v112_v22 }
  0x92   :  { %p2217_p3 = por %p2216_p2, %p2215_p1 }
  0x93   :  { %v2098_v24 = vpack.c.bf16 %v121_v23, %v120_v21 }
  0x94   :  { %p2218_p4 = pnand %p2217_p3, %p2211_p0 }
  0x95   :  { %2099 = vmatprep.subr.bf16.mxu0 %v2098_v24 }
  0x96   :  { %2101 = vmatpush3.bf16.msra.mxu0 %v2098_v24 }
  0x97   :  { %2106 = vmatprep.subr.bf16.mxu0 %v2105_v1 }
  0xa4   :  { %v128_v25 = vpop.xlane.xlu0 %127 }
  0xa5   :  { %2168 = vrsqrt.f32 %v128_v25  ;;  %vm132_vm4 = vcmp.gt.f32.partialorder %v128_v25, 0.0 }
  0xa8   :  { %v131_v26 = vpop.xlane.xlu0 %130 }
  0xa9   :  { %2170 = vrsqrt.f32 %v131_v26  ;;  %vm133_vm5 = vcmp.gt.f32.partialorder %v131_v26, 0.0 }
  0xac   :  { %v251_v13 = vpop.xlane.xlu0 %250 }
  0xad   :  { %2172 = vrsqrt.f32 %v251_v13 }
  0xaf   :  { %v2169_v27 = vpop.eup %2168 }
  0xb0   :  { %v136_v28 = vsel %vm132_vm4, %v2169_v27, 0.0 }
  0xb1   :  { %v140_v30 = vmul.f32 %v2390_v9, %v136_v28  ;;  %v138_v42 = vmul.f32 %v136_v28, %v123_v11  ;;  %v2109_v11 = vpack.c.bf16 %v492_v6, %v491_v2 }
  0xb3   :  { %v2171_v29 = vpop.eup %2170  ;;  %v142_v33 = vsel %vm125_vm1, %v140_v30, 0.0 }
  0xb4   :  { %v137_v31 = vsel %vm133_vm5, %v2171_v29, 0.0 }
  0xb5   :  { %v141_v32 = vmul.f32 %v2402_v12, %v137_v31  ;;  %v139_v41 = vmul.f32 %v137_v31, %v124_v14 }
  0xb7   :  { %v143_v34 = vsel %vm125_vm1, %v141_v32, 0.0  ;;  %v2173_v14 = vpop.eup %2172 }
  0xb8   :  { %v144_v35 = vadd.f32 %v143_v34, %v142_v33  ;;  %v271_v15 = vrot.slane %v2173_v14, %v2425_v47 }
  0xba   :  { %v145_v36 = vrot.slane %v144_v35, 4 }
  0xbc   :  { %v146_v37 = vadd.f32 %v145_v36, %v144_v35 }
  0xbe   :  { %v147_v38 = vrot.slane %v146_v37, 2 }
  0xc0   :  { %v148_v39 = vadd.f32 %v147_v38, %v146_v37 }
  0xc2   :  { %v149_v40 = vrot.slane %v148_v39, 1 }
  0xc4   :  { %v150_v43 = vadd.f32 %v149_v40, %v148_v39 }
  0xc6   :  { %v151_v44 = vmul.f32 %v150_v43, %v138_v42  ;;  %v152_v45 = vmul.f32 %v150_v43, %v139_v41 }
  0xc8   :  { %1991 = vmatprep.mubr.msk.f32.mxu0 %vm125_vm1, %v151_v44 }
  0xc9   :  { %1992 = vmatmul.mubr.msk.f32.vlgmr.msra.gmra.mrb[0].mxu0 %vm125_vm1, %v152_v45 }
  0xca   :  { %2108 = vmatpush3.bf16.msra.mxu0 %v2105_v1 }
  0xcb   :  { %2110 = vmatprep.subr.bf16.mxu0 %v2109_v11 }
  0xce   :  { %2112 = vmatpush3.bf16.msra.mxu0 %v2109_v11 }
 0x19c   :  { %v1993_v48 = vpop.f32.mrb[0].mxu0 }
 0x19d   :  { %v237_v49 = vadd.f32 %v1993_v48, %v1895_v46  ;;  %v231_v50 = vpop.f32.mrb[1].mxu0 }
 0x19e   :  { %v232_v51 = vadd.f32 %v1895_v46, %v231_v50 }
 0x19f   :  { %vm241_vm6 = vcmp.gt.f32.partialorder %v237_v49, 0.0  ;;  %v243_v53 = vmul.f32 0.1, %v237_v49 }
 0x1a0   :  { %vm240_vm7 = vcmp.gt.f32.partialorder %v232_v51, 0.0  ;;  %v242_v54 = vmul.f32 0.1, %v232_v51 }
 0x1a1   :  { %v245_v55 = vsel %vm241_vm6, %v237_v49, %v243_v53  ;;  %v2260_v49 = vmov 0.0|0.0  }
 0x1a2   :  { %v260_v56 = vmul.f32 %v257_v52, %v245_v55  ;;  %v244_v57 = vsel %vm240_vm7, %v232_v51, %v242_v54  ;;  %2102 = vmatprep.subr.bf16.mxu1 %v2260_v49  ;;  %vm2261_vm7 = vmmov 0  }
 0x1a3   :  { %v259_v58 = vmul.f32 %v257_v52, %v244_v57  ;;  %1998 = vmatprep.mubr.msk.f32.mxu1 %vm2261_vm7, %v2259_v8 }
 0x1a4   :  { %v265_v59 = vsel %vm261_vm8, %v260_v56, 0.0 }
 0x1a5   :  { %266 = vadd.xlane.f32.xlu0 %v265_v59  ;;  %v262_v60 = vsel %vm261_vm8, %v259_v58, 0.0 }
 0x1a6   :  { %263 = vadd.xlane.f32.xlu1 %v262_v60 }
 0x1b7   :  { %84 = vperm.xlu1 %2166, %v2433_v61  }
 0x1bb   :  { %81 = vperm.xlu0 %2167, %v2439_v62  }
 0x232   :  { %v267_v16 = vpop.xlane.xlu0 %266 }
 0x233   :  { %v273_v17 = vmul.f32 %v271_v15, %v267_v16  ;;  %v264_v18 = vpop.xlane.xlu1 %263 }
 0x234   :  { %v272_v19 = vmul.f32 %v271_v15, %v264_v18 }
 0x235   :  { %2174 = vtanh.f32 %v273_v17 }
 0x236   :  { %2176 = vtanh.f32 %v272_v19 }
 0x237   :  { %v85_v21 = vpop.permute.xlu1 %84 }
 0x238   :  { %vm91_vm9 = vcmp.eq.s32.totalorder %v85_v21, %v2458_v20 }
 0x239   :  { %v2462_v22 = vsel %vm91_vm9, 1.0, %v2259_v8 }
 0x23a   :  { %v310_v23 = vsel %vm125_vm1, %v2462_v22, 0.0  ;;  %v82_v24 = vpop.permute.xlu0 %81 }
 0x23b   :  { %311 = vadd.xlane.f32.xlu1 %v310_v23  ;;  %vm90_vm10 = vcmp.eq.s32.totalorder %v82_v24, %v2458_v20 }
 0x23c   :  { %v2468_v25 = vsel %vm90_vm10, 1.0, %v2259_v8 }
 0x23d   :  { %v307_v26 = vsel %vm125_vm1, %v2468_v25, 0.0 }
 0x23e   :  { %308 = vadd.xlane.f32.xlu0 %v307_v26 }
 0x23f   :  { %v2175_v27 = vpop.eup %2174 }
 0x240   :  { %v2177_v28 = vpop.eup %2176  ;;  %v277_v29 = vmul.f32 %v2175_v27, %v2402_v12  ;;  %v2476_v32 = vmul.f32 %v2175_v27, %v245_v55 }
 0x241   :  { %v2473_v30 = vmul.f32 %v2177_v28, %v244_v57  ;;  %v276_v31 = vmul.f32 %v2177_v28, %v2390_v9 }
 0x242   :  { %v279_v33 = vsel %vm125_vm1, %v277_v29, 0.0 }
 0x243   :  { %2009 = vmatprep.mubr.msk.f32.mxu0 %vm261_vm8, %v2473_v30  ;;  %v278_v34 = vsel %vm125_vm1, %v276_v31, 0.0 }
 0x244   :  { %2010 = vmatmul.mubr.msk.f32.vlgmr.msra.gmra.mrb[2].mxu0 %vm261_vm8, %v2476_v32  ;;  %v280_v35 = vadd.f32 %v279_v33, %v278_v34 }
 0x246   :  { %v281_v36 = vrot.slane %v280_v35, 4 }
 0x248   :  { %v282_v37 = vadd.f32 %v281_v36, %v280_v35 }
 0x24a   :  { %v283_v38 = vrot.slane %v282_v37, 2 }
 0x24c   :  { %v284_v39 = vadd.f32 %v283_v38, %v282_v37 }
 0x24e   :  { %v285_v40 = vrot.slane %v284_v39, 1 }
 0x250   :  { %v286_v41 = vadd.f32 %v285_v40, %v284_v39 }
 0x252   :  { %vm287_vm12 = vcmp.gt.f32.partialorder %v286_v41, %v2177_v28  ;;  %vm289_vm13 = vcmp.eq.f32.partialorder %v286_v41, %v2177_v28  ;;  %vm290_vm14 = vcmp.eq.f32.partialorder %v286_v41, %v2175_v27  ;;  %vm288_vm2 = vcmp.gt.f32.partialorder %v286_v41, %v2175_v27 }
 0x253   :  { %vm293_vm0 = vmand %vm289_vm13, %vm291_vm11 }
 0x254   :  { %vm295_vm4 = vmor %vm287_vm12, %vm293_vm0  ;;  %vm96_vm12 = vcmp.eq.s32.totalorder %v2372_v3, %v2458_v20 }
 0x255   :  { %v297_v42 = vsel %vm295_vm4, 1.0, %v2259_v8  ;;  %vm294_vm5 = vmand %vm290_vm14, %vm292_vm15  ;;  %v2522_v15 = vsel %vm96_vm12, 1.0, %v2259_v8 }
 0x256   :  { %v299_v43 = vmul.f32 %v2468_v25, %v297_v42  ;;  %vm296_vm6 = vmor %vm288_vm2, %vm294_vm5 }
 0x257   :  { %v298_v44 = vsel %vm296_vm6, 1.0, %v2259_v8 }
 0x258   :  { %v301_v45 = vsel %vm125_vm1, %v299_v43, 0.0  ;;  %v300_v46 = vmul.f32 %v2462_v22, %v298_v44 }
 0x259   :  { %302 = vadd.xlane.f32.xlu0 %v301_v45 }
 0x25a   :  { %v304_v48 = vsel %vm125_vm1, %v300_v46, 0.0 }
 0x25d   :  { %305 = vadd.xlane.f32.xlu0 %v304_v48 }
 0x2c8   :  { %v312_v52 = vpop.xlane.xlu1 %311 }
 0x2c9   :  { %v314_v54 = vmul.f32 0.5, %v312_v52 }
 0x2cb   :  { %v309_v50 = vpop.xlane.xlu0 %308  ;;  %v316_v57 = vceil.f32 %v314_v54 }
 0x2cc   :  { %v313_v51 = vmul.f32 0.5, %v309_v50 }
 0x2ce   :  { %v315_v53 = vceil.f32 %v313_v51 }
 0x2e6   :  { %v303_v55 = vpop.xlane.xlu0 %302 }
 0x2e7   :  { %vm317_vm9 = vcmp.lt.f32.partialorder %v303_v55, %v315_v53 }
 0x2e8   :  { %v2504_v56 = vsel %vm317_vm9, 1.0, %v2259_v8 }
 0x2e9   :  { %v321_v59 = vmul.f32 %v2390_v9, %v2504_v56  ;;  %v338_v63 = vmul.f32 %v2473_v30, %v2504_v56  ;;  %v334_v20 = vmul.f32 %v2504_v56, %v2379_v5  ;;  %v697_v5 = vld [vmem:[%s2938_s11] sm:$0x1] }
 0x2ea   :  { %v306_v58 = vpop.xlane.xlu0 %305  ;;  %v698_v35 = vmul.f32 %v697_v5, %v697_v5 }
 0x2eb   :  { %vm318_vm10 = vcmp.lt.f32.partialorder %v306_v58, %v316_v57  ;;  %v323_v6 = vsel %vm125_vm1, %v321_v59, 0.0 }
 0x2ec   :  { %v2509_v60 = vsel %vm318_vm10, 1.0, %v2259_v8  ;;  %v699_v36 = vsel %vm248_vm3, %v698_v35, 0.0  ;;  %v927_v35 = vld [vmem:[%s2935_s8 + $0x8] sm:$0xff] }
 0x2ed   :  { %v339_v0 = vmul.f32 %v2476_v32, %v2509_v60  ;;  %v322_v1 = vmul.f32 %v2402_v12, %v2509_v60  ;;  %v335_v23 = vmul.f32 %v2509_v60, %v2395_v10 }
 0x2ef   :  { %v2103_v2 = vpack.c.bf16 %v339_v0, %v338_v63  ;;  %v324_v11 = vsel %vm125_vm1, %v322_v1, 0.0 }
 0x2f0   :  { %v325_v13 = vadd.f32 %v324_v11, %v323_v6 }
 0x2f1   :  { %2104 = vmatpush3.bf16.msra.mxu1 %v2103_v2  ;;  %v1905_v2 = vld [vmem:[%s2934_s7] ss:$0 sm:$0xff] }
 0x2f2   :  { %v326_v14 = vrot.slane %v325_v13, 4 }
 0x2f4   :  { %v327_v16 = vadd.f32 %v326_v14, %v325_v13  ;;  %1999 = vmatmul.mubr.msk.f32.vlgmr.msra.gmra.mrb[0].mxu1 %vm125_vm1, %v2522_v15 }
 0x2f6   :  { %v328_v17 = vrot.slane %v327_v16, 2 }
 0x2f8   :  { %v329_v18 = vadd.f32 %v328_v17, %v327_v16  ;;  %v707_v16 = vrot.slane %v697_v5, %v2425_v47  ;;  %v926_v5 = vld [vmem:[%s2935_s8] sm:$0xff] }
 0x2fa   :  { %v330_v19 = vrot.slane %v329_v18, 1 }
 0x2fc   :  { %v2526_v21 = vadd.f32 %v330_v19, %v329_v18 }
 0x2fe   :  { %v2533_v24 = vmul.f32 %v335_v23, %v2526_v21  ;;  %v2536_v26 = vmul.f32 %v334_v20, %v2526_v21 }
 0x300   :  { %v576_v27 = vadd.f32 %v2533_v24, %v322_v1  ;;  %v575_v28 = vadd.f32 %v2536_v26, %v321_v59 }
 0x302   :  { %v580_v29 = vsel %vm125_vm1, %v576_v27, 0.0  ;;  %v577_v31 = vsel %vm125_vm1, %v575_v28, 0.0 }
 0x303   :  { %581 = vadd.xlane.f32.xlu0 %v580_v29  ;;  %578 = vadd.xlane.f32.xlu1 %v577_v31  ;;  %v737_v29 = vmul.f32 %v2462_v22, %v2526_v21 }
 0x307   :  { %700 = vadd.xlane.f32.xlu1 %v699_v36  ;;  %v928_v36 = vld [vmem:[%s2935_s8 + $0x10] sm:$0xff] }
 0x317   :  { %v2011_v10 = vpop.f32.mrb[2].mxu0 }
 0x318   :  { %v565_v33 = vpop.f32.mrb[3].mxu0 }
 0x319   :  { %v2113_v34 = vpack.c.bf16 %v2011_v10, %v565_v33  ;;  %v736_v10 = vmul.f32 %v2468_v25, %v2526_v21  ;;  %v759_v33 = vsel %vm125_vm1, %v737_v29, 0.0 }
 0x31b   :  { %2114 = vmatprep.subr.bf16.mxu1 %v2113_v34 }
 0x31c   :  { %2116 = vmatpush3.bf16.msra.mxu1 %v2113_v34  ;;  %v756_v34 = vsel %vm125_vm1, %v736_v10, 0.0 }
 0x31d   :  { %2117 = vmatprep.subr.bf16.mxu1 %v2260_v49 }
 0x390   :  { %v582_v37 = vpop.xlane.xlu0 %581  ;;  %v579_v38 = vpop.xlane.xlu1 %578 }
 0x391   :  { %2178 = vrsqrt.f32 %v582_v37  ;;  %vm584_vm13 = vcmp.gt.f32.partialorder %v582_v37, 0.0  ;;  %vm583_vm14 = vcmp.gt.f32.partialorder %v579_v38, 0.0  ;;  %v2120_v37 = vpack.c.bf16 %v927_v35, %v926_v5 }
 0x392   :  { %2180 = vrsqrt.f32 %v579_v38  ;;  %v929_v38 = vld [vmem:[%s2935_s8 + $0x18] sm:$0xff] }
 0x393   :  { %2121 = vmatprep.subr.bf16.mxu0 %v2120_v37 }
 0x394   :  { %2123 = vmatpush3.bf16.msra.mxu0 %v2120_v37 }
 0x39b   :  { %v2179_v39 = vpop.eup %2178 }
 0x39c   :  { %v2181_v40 = vpop.eup %2180  ;;  %v588_v41 = vsel %vm584_vm13, %v2179_v39, 0.0  ;;  %v2124_v39 = vpack.c.bf16 %v929_v38, %v928_v36 }
 0x39d   :  { %v592_v42 = vmul.f32 %v2402_v12, %v588_v41  ;;  %v587_v43 = vsel %vm583_vm14, %v2181_v40, 0.0  ;;  %v590_v55 = vmul.f32 %v588_v41, %v576_v27  ;;  %v701_v40 = vpop.xlane.xlu1 %700 }
 0x39e   :  { %v591_v44 = vmul.f32 %v2390_v9, %v587_v43  ;;  %v589_v57 = vmul.f32 %v587_v43, %v575_v28  ;;  %2125 = vmatprep.subr.bf16.mxu0 %v2124_v39  ;;  %2182 = vrsqrt.f32 %v701_v40 }
 0x39f   :  { %v594_v45 = vsel %vm125_vm1, %v592_v42, 0.0  ;;  %2127 = vmatpush3.bf16.msra.mxu0 %v2124_v39 }
 0x3a0   :  { %v593_v46 = vsel %vm125_vm1, %v591_v44, 0.0  ;;  %2136 = vmatprep.subr.bf16.mxu0 %v2260_v49 }
 0x3a1   :  { %v595_v48 = vadd.f32 %v594_v45, %v593_v46 }
 0x3a3   :  { %v596_v50 = vrot.slane %v595_v48, 4 }
 0x3a5   :  { %v597_v51 = vadd.f32 %v596_v50, %v595_v48 }
 0x3a7   :  { %v598_v52 = vrot.slane %v597_v51, 2 }
 0x3a8   :  { %v2183_v41 = vpop.eup %2182 }
 0x3a9   :  { %v599_v53 = vadd.f32 %v598_v52, %v597_v51  ;;  %v720_v42 = vrot.slane %v2183_v41, %v2425_v47 }
 0x3ab   :  { %v600_v54 = vrot.slane %v599_v53, 1 }
 0x3ad   :  { %v601_v58 = vadd.f32 %v600_v54, %v599_v53 }
 0x3af   :  { %v602_v59 = vmul.f32 %v601_v58, %v589_v57  ;;  %v603_v63 = vmul.f32 %v601_v58, %v590_v55 }
 0x3b1   :  { %2016 = vmatprep.mubr.msk.f32.mxu1 %vm125_vm1, %v602_v59 }
 0x3b2   :  { %2017 = vmatmul.mubr.msk.f32.vlgmr.msra.gmra.mrb[2].mxu1 %vm125_vm1, %v603_v63 }
 0x3b3   :  { %2023 = vmatprep.mubr.msk.f32.mxu1 %vm2261_vm7, %v2259_v8 }
 0x3c7   :  { %v2555_v0 = vpop.f32.mrb[0].mxu1 }
 0x3c8   :  { %v2000_v1 = vpop.f32.mrb[1].mxu1 }
 0x485   :  { %v2018_v6 = vpop.f32.mrb[2].mxu1 }
 0x486   :  { %v688_v11 = vadd.f32 %v2018_v6, %v1905_v2  ;;  %v682_v13 = vpop.f32.mrb[3].mxu1 }
 0x487   :  { %v683_v14 = vadd.f32 %v1905_v2, %v682_v13 }
 0x488   :  { %vm692_vm0 = vcmp.gt.f32.partialorder %v688_v11, 0.0  ;;  %v694_v17 = vmul.f32 0.1, %v688_v11 }
 0x489   :  { %vm691_vm2 = vcmp.gt.f32.partialorder %v683_v14, 0.0  ;;  %v693_v18 = vmul.f32 0.1, %v683_v14 }
 0x48a   :  { %v696_v19 = vsel %vm692_vm0, %v688_v11, %v694_v17 }
 0x48b   :  { %v710_v23 = vmul.f32 %v707_v16, %v696_v19  ;;  %v695_v20 = vsel %vm691_vm2, %v683_v14, %v693_v18 }
 0x48c   :  { %v709_v27 = vmul.f32 %v707_v16, %v695_v20 }
 0x48d   :  { %v714_v28 = vsel %vm261_vm8, %v710_v23, 0.0 }
 0x48e   :  { %715 = vadd.xlane.f32.xlu1 %v714_v28  ;;  %v711_v31 = vsel %vm261_vm8, %v709_v27, 0.0 }
 0x48f   :  { %712 = vadd.xlane.f32.xlu0 %v711_v31 }
 0x492   :  { %760 = vadd.xlane.f32.xlu1 %v759_v33 }
 0x493   :  { %757 = vadd.xlane.f32.xlu0 %v756_v34 }
 0x51b   :  { %v716_v43 = vpop.xlane.xlu1 %715 }
 0x51c   :  { %v722_v44 = vmul.f32 %v720_v42, %v716_v43  ;;  %v713_v45 = vpop.xlane.xlu0 %712 }
 0x51d   :  { %v721_v46 = vmul.f32 %v720_v42, %v713_v45 }
 0x51e   :  { %2184 = vtanh.f32 %v722_v44 }
 0x51f   :  { %2186 = vtanh.f32 %v721_v46  ;;  %v761_v23 = vpop.xlane.xlu1 %760 }
 0x520   :  { %v763_v27 = vmul.f32 0.5, %v761_v23 }
 0x522   :  { %v765_v31 = vceil.f32 %v763_v27 }
 0x528   :  { %v2185_v48 = vpop.eup %2184 }
 0x529   :  { %v2187_v50 = vpop.eup %2186  ;;  %v726_v51 = vmul.f32 %v2185_v48, %v2402_v12  ;;  %v2587_v54 = vmul.f32 %v2185_v48, %v696_v19 }
 0x52a   :  { %v2584_v52 = vmul.f32 %v2187_v50, %v695_v20  ;;  %v725_v53 = vmul.f32 %v2187_v50, %v2390_v9  ;;  %v758_v20 = vpop.xlane.xlu0 %757 }
 0x52b   :  { %v728_v55 = vsel %vm125_vm1, %v726_v51, 0.0  ;;  %v762_v28 = vmul.f32 0.5, %v758_v20 }
 0x52c   :  { %2034 = vmatprep.mubr.msk.f32.mxu0 %vm261_vm8, %v2584_v52  ;;  %v727_v57 = vsel %vm125_vm1, %v725_v53, 0.0 }
 0x52d   :  { %2035 = vmatmul.mubr.msk.f32.vlgmr.msra.gmra.mrb[4].mxu0 %vm261_vm8, %v2587_v54  ;;  %v729_v58 = vadd.f32 %v728_v55, %v727_v57  ;;  %v764_v34 = vceil.f32 %v762_v28 }
 0x52e   :  { %2055 = vmatprep.mubr.msk.f32.mxu0 %vm2261_vm7, %v2259_v8 }
 0x52f   :  { %v730_v59 = vrot.slane %v729_v58, 4 }
 0x531   :  { %v731_v63 = vadd.f32 %v730_v59, %v729_v58 }
 0x533   :  { %v732_v1 = vrot.slane %v731_v63, 2 }
 0x535   :  { %v733_v2 = vadd.f32 %v732_v1, %v731_v63 }
 0x537   :  { %v734_v6 = vrot.slane %v733_v2, 1 }
 0x539   :  { %v735_v11 = vadd.f32 %v734_v6, %v733_v2 }
 0x53b   :  { %vm739_vm4 = vcmp.gt.f32.partialorder %v735_v11, %v2185_v48  ;;  %vm741_vm5 = vcmp.eq.f32.partialorder %v735_v11, %v2185_v48  ;;  %vm740_vm6 = vcmp.eq.f32.partialorder %v735_v11, %v2187_v50  ;;  %vm738_vm10 = vcmp.gt.f32.partialorder %v735_v11, %v2187_v50 }
 0x53c   :  { %vm743_vm9 = vmand %vm741_vm5, %vm292_vm15 }
 0x53d   :  { %vm745_vm12 = vmor %vm739_vm4, %vm743_vm9 }
 0x53e   :  { %v747_v13 = vsel %vm745_vm12, 1.0, %v2259_v8  ;;  %vm742_vm13 = vmand %vm740_vm6, %vm291_vm11 }
 0x53f   :  { %v749_v14 = vmul.f32 %v747_v13, %v737_v29  ;;  %vm744_vm14 = vmor %vm738_vm10, %vm742_vm13 }
 0x540   :  { %v746_v16 = vsel %vm744_vm14, 1.0, %v2259_v8 }
 0x541   :  { %v753_v17 = vsel %vm125_vm1, %v749_v14, 0.0  ;;  %v748_v18 = vmul.f32 %v746_v16, %v736_v10 }
 0x542   :  { %754 = vadd.xlane.f32.xlu1 %v753_v17 }
 0x543   :  { %v750_v19 = vsel %vm125_vm1, %v748_v18, 0.0 }
 0x544   :  { %751 = vadd.xlane.f32.xlu0 %v750_v19 }
 0x5cf   :  { %v755_v33 = vpop.xlane.xlu1 %754 }
 0x5d0   :  { %vm767_vm0 = vcmp.lt.f32.partialorder %v755_v33, %v765_v31 }
 0x5d1   :  { %v752_v5 = vpop.xlane.xlu0 %751  ;;  %v769_v29 = vsel %vm767_vm0, 1.0, %v2259_v8 }
 0x5d2   :  { %vm766_vm2 = vcmp.lt.f32.partialorder %v752_v5, %v764_v34  ;;  %v2609_v35 = vmul.f32 %v769_v29, %v2509_v60 }
 0x5d3   :  { %v768_v10 = vsel %vm766_vm2, 1.0, %v2259_v8 }
 0x5d4   :  { %v2613_v36 = vmul.f32 %v768_v10, %v2504_v56  ;;  %v790_v37 = vmul.f32 %v2587_v54, %v2609_v35  ;;  %v773_v38 = vmul.f32 %v2402_v12, %v2609_v35  ;;  %v786_v55 = vmul.f32 %v2609_v35, %v2533_v24 }
 0x5d6   :  { %v789_v39 = vmul.f32 %v2584_v52, %v2613_v36  ;;  %v772_v40 = vmul.f32 %v2390_v9, %v2613_v36  ;;  %v775_v41 = vsel %vm125_vm1, %v773_v38, 0.0  ;;  %v785_v57 = vmul.f32 %v2613_v36, %v2536_v26  ;;  %v1134_v26 = vld [vmem:[%s2939_s12] sm:$0x1] }
 0x5d7   :  { %v1135_v14 = vmul.f32 %v1134_v26, %v1134_v26 }
 0x5d8   :  { %v2118_v42 = vpack.c.bf16 %v790_v37, %v789_v39  ;;  %v774_v43 = vsel %vm125_vm1, %v772_v40, 0.0 }
 0x5d9   :  { %v776_v44 = vadd.f32 %v775_v41, %v774_v43  ;;  %v1136_v16 = vsel %vm248_vm3, %v1135_v14, 0.0 }
 0x5da   :  { %2119 = vmatpush3.bf16.msra.mxu1 %v2118_v42 }
 0x5db   :  { %v777_v45 = vrot.slane %v776_v44, 4 }
 0x5dd   :  { %v778_v46 = vadd.f32 %v777_v45, %v776_v44  ;;  %2024 = vmatmul.mubr.msk.f32.vlgmr.msra.gmra.mrb[4].mxu1 %vm125_vm1, %v2522_v15 }
 0x5df   :  { %v779_v48 = vrot.slane %v778_v46, 2 }
 0x5e1   :  { %v780_v50 = vadd.f32 %v779_v48, %v778_v46  ;;  %v1915_v48 = vld [vmem:[%s2936_s9] ss:$0 sm:$0xff] }
 0x5e3   :  { %v781_v51 = vrot.slane %v780_v50, 1 }
 0x5e5   :  { %v2627_v53 = vadd.f32 %v781_v51, %v780_v50 }
 0x5e7   :  { %v2634_v58 = vmul.f32 %v786_v55, %v2627_v53  ;;  %v2637_v59 = vmul.f32 %v785_v57, %v2627_v53 }
 0x5e9   :  { %v1013_v63 = vadd.f32 %v2634_v58, %v773_v38  ;;  %v1012_v1 = vadd.f32 %v2637_v59, %v772_v40 }
 0x5eb   :  { %v1017_v2 = vsel %vm125_vm1, %v1013_v63, 0.0  ;;  %v1014_v6 = vsel %vm125_vm1, %v1012_v1, 0.0 }
 0x5ec   :  { %1018 = vadd.xlane.f32.xlu1 %v1017_v2  ;;  %1015 = vadd.xlane.f32.xlu0 %v1014_v6 }
 0x5f0   :  { %1137 = vadd.xlane.f32.xlu0 %v1136_v16  ;;  %v1174_v16 = vmul.f32 %v2462_v22, %v2627_v53 }
 0x600   :  { %v2036_v24 = vpop.f32.mrb[4].mxu0 }
 0x601   :  { %v1002_v11 = vpop.f32.mrb[5].mxu0 }
 0x602   :  { %v2128_v13 = vpack.c.bf16 %v2036_v24, %v1002_v11 }
 0x604   :  { %2129 = vmatprep.subr.bf16.mxu1 %v2128_v13 }
 0x605   :  { %2131 = vmatpush3.bf16.msra.mxu1 %v2128_v13 }
 0x679   :  { %v1019_v17 = vpop.xlane.xlu1 %1018  ;;  %v1016_v18 = vpop.xlane.xlu0 %1015 }
 0x67a   :  { %2188 = vrsqrt.f32 %v1019_v17  ;;  %vm1021_vm4 = vcmp.gt.f32.partialorder %v1019_v17, 0.0  ;;  %vm1020_vm5 = vcmp.gt.f32.partialorder %v1016_v18, 0.0 }
 0x67b   :  { %2190 = vrsqrt.f32 %v1016_v18  ;;  %v1173_v18 = vmul.f32 %v2468_v25, %v2627_v53 }
 0x684   :  { %v2189_v19 = vpop.eup %2188 }
 0x685   :  { %v2191_v23 = vpop.eup %2190  ;;  %v1025_v20 = vsel %vm1021_vm4, %v2189_v19, 0.0  ;;  %v1193_v19 = vsel %vm125_vm1, %v1173_v18, 0.0 }
 0x686   :  { %v1029_v27 = vmul.f32 %v2402_v12, %v1025_v20  ;;  %v1024_v28 = vsel %vm1020_vm5, %v2191_v23, 0.0  ;;  %v1027_v40 = vmul.f32 %v1025_v20, %v1013_v63  ;;  %v1144_v63 = vrot.slane %v1134_v26, %v2425_v47  ;;  %v1138_v23 = vpop.xlane.xlu0 %1137 }
 0x687   :  { %v1028_v31 = vmul.f32 %v2390_v9, %v1024_v28  ;;  %v1026_v41 = vmul.f32 %v1024_v28, %v1012_v1  ;;  %v1196_v26 = vsel %vm125_vm1, %v1174_v16, 0.0  ;;  %2192 = vrsqrt.f32 %v1138_v23 }
 0x688   :  { %v1031_v33 = vsel %vm125_vm1, %v1029_v27, 0.0  ;;  %vm422_vm5 = vcmp.eq.s32.totalorder %v2433_v61, 0 }
 0x689   :  { %v1030_v34 = vsel %vm125_vm1, %v1028_v31, 0.0 }
 0x68a   :  { %v1032_v5 = vadd.f32 %v1031_v33, %v1030_v34 }
 0x68c   :  { %v1033_v29 = vrot.slane %v1032_v5, 4 }
 0x68e   :  { %v1034_v10 = vadd.f32 %v1033_v29, %v1032_v5 }
 0x690   :  { %v1035_v37 = vrot.slane %v1034_v10, 2 }
 0x691   :  { %v2193_v20 = vpop.eup %2192 }
 0x692   :  { %v1036_v38 = vadd.f32 %v1035_v37, %v1034_v10  ;;  %v1157_v27 = vrot.slane %v2193_v20, %v2425_v47 }
 0x694   :  { %v1037_v39 = vrot.slane %v1036_v38, 1 }
 0x696   :  { %v1038_v42 = vadd.f32 %v1037_v39, %v1036_v38 }
 0x698   :  { %v1039_v43 = vmul.f32 %v1038_v42, %v1026_v41  ;;  %v1040_v44 = vmul.f32 %v1038_v42, %v1027_v40 }
 0x69a   :  { %2041 = vmatprep.mubr.msk.f32.mxu1 %vm125_vm1, %v1039_v43 }
 0x69b   :  { %2042 = vmatmul.mubr.msk.f32.vlgmr.msra.gmra.mrb[6].mxu1 %vm125_vm1, %v1040_v44 }
 0x6b0   :  { %v2653_v45 = vpop.f32.mrb[4].mxu1 }
 0x6b1   :  { %v2025_v46 = vpop.f32.mrb[5].mxu1 }
 0x76e   :  { %v2043_v50 = vpop.f32.mrb[6].mxu1 }
 0x76f   :  { %v1125_v51 = vadd.f32 %v2043_v50, %v1915_v48  ;;  %v1119_v55 = vpop.f32.mrb[7].mxu1 }
 0x770   :  { %v1120_v57 = vadd.f32 %v1915_v48, %v1119_v55 }
 0x771   :  { %vm1129_vm3 = vcmp.gt.f32.partialorder %v1125_v51, 0.0  ;;  %v1131_v1 = vmul.f32 0.1, %v1125_v51 }
 0x772   :  { %vm1128_vm6 = vcmp.gt.f32.partialorder %v1120_v57, 0.0  ;;  %v1130_v2 = vmul.f32 0.1, %v1120_v57 }
 0x773   :  { %v1133_v6 = vsel %vm1129_vm3, %v1125_v51, %v1131_v1  ;;  %v861_v1 = vmul.f32 %v2522_v15, %v2627_v53  ;;  %vm455_vm3 = vcmp.eq.s32.totalorder %v2439_v62, 1 }
 0x774   :  { %v1147_v24 = vmul.f32 %v1144_v63, %v1133_v6  ;;  %v1132_v11 = vsel %vm1128_vm6, %v1120_v57, %v1130_v2  ;;  %v413_v2 = vmul.f32 %v2522_v15, %v2526_v21  ;;  %v424_v21 = vsel %vm422_vm5, %v2509_v60, 0.0 }
 0x775   :  { %v1146_v13 = vmul.f32 %v1144_v63, %v1132_v11  ;;  %vm456_vm6 = vcmp.eq.s32.totalorder %v2433_v61, 1 }
 0x776   :  { %v1151_v14 = vsel %vm261_vm8, %v1147_v24, 0.0 }
 0x777   :  { %1152 = vadd.xlane.f32.xlu0 %v1151_v14  ;;  %v1148_v17 = vsel %vm261_vm8, %v1146_v13, 0.0  ;;  %v1900_v13 = vadd.f32 -1.0, %v424_v21 }
 0x778   :  { %1149 = vadd.xlane.f32.xlu1 %v1148_v17 }
 0x77b   :  { %1197 = vadd.xlane.f32.xlu0 %v1196_v26  ;;  %v428_v26 = vmul.f32 1e+30, %v1900_v13 }
 0x77c   :  { %1194 = vadd.xlane.f32.xlu1 %v1193_v19 }
 0x804   :  { %v1153_v28 = vpop.xlane.xlu0 %1152 }
 0x805   :  { %v1159_v22 = vmul.f32 %v1157_v27, %v1153_v28  ;;  %v1150_v31 = vpop.xlane.xlu1 %1149 }
 0x806   :  { %v1158_v33 = vmul.f32 %v1157_v27, %v1150_v31 }
 0x807   :  { %2194 = vtanh.f32 %v1159_v22 }
 0x808   :  { %2196 = vtanh.f32 %v1158_v33  ;;  %v1198_v33 = vpop.xlane.xlu0 %1197 }
 0x811   :  { %v2195_v34 = vpop.eup %2194 }
 0x812   :  { %v2197_v25 = vpop.eup %2196  ;;  %v2668_v5 = vmul.f32 %v2195_v34, %v1133_v6  ;;  %v1163_v29 = vmul.f32 %v2195_v34, %v2402_v12 }
 0x813   :  { %v2671_v10 = vmul.f32 %v2197_v25, %v1132_v11  ;;  %v1162_v37 = vmul.f32 %v2197_v25, %v2390_v9  ;;  %v457_v11 = vsel %vm455_vm3, %v2504_v56, 0.0 }
 0x814   :  { %v1165_v38 = vsel %vm125_vm1, %v1163_v29, 0.0 }
 0x815   :  { %v2132_v47 = vpack.c.bf16 %v2668_v5, %v2671_v10  ;;  %v1164_v39 = vsel %vm125_vm1, %v1162_v37, 0.0 }
 0x816   :  { %v1166_v40 = vadd.f32 %v1165_v38, %v1164_v39 }
 0x817   :  { %2133 = vmatprep.subr.bf16.mxu1 %v2132_v47 }
 0x818   :  { %2135 = vmatpush3.bf16.msra.mxu1 %v2132_v47  ;;  %v1167_v41 = vrot.slane %v1166_v40, 4 }
 0x819   :  { %2139 = vmatprep.subr.bf16.mxu1 %v2260_v49 }
 0x81a   :  { %v1168_v42 = vadd.f32 %v1167_v41, %v1166_v40 }
 0x81c   :  { %v1169_v43 = vrot.slane %v1168_v42, 2 }
 0x81e   :  { %v1170_v44 = vadd.f32 %v1169_v43, %v1168_v42 }
 0x820   :  { %v1171_v46 = vrot.slane %v1170_v44, 1 }
 0x822   :  { %v1172_v48 = vadd.f32 %v1171_v46, %v1170_v44 }
 0x824   :  { %vm1176_vm9 = vcmp.gt.f32.partialorder %v1172_v48, %v2195_v34  ;;  %vm1178_vm10 = vcmp.eq.f32.partialorder %v1172_v48, %v2195_v34  ;;  %vm1177_vm12 = vcmp.eq.f32.partialorder %v1172_v48, %v2197_v25  ;;  %vm1175_vm14 = vcmp.gt.f32.partialorder %v1172_v48, %v2197_v25 }
 0x825   :  { %vm1180_vm13 = vmand %vm1178_vm10, %vm292_vm15  ;;  %vm414_vm15 = vcmask 123904   ;;  %v1200_v34 = vmul.f32 0.5, %v1198_v33  ;;  %v897_v33 = vsel %vm455_vm3, %v2613_v36, 0.0 }
 0x826   :  { %vm1182_vm0 = vmor %vm1176_vm9, %vm1180_vm13  ;;  %v862_v4 = vsel %vm414_vm15, %v861_v1, 0.0  ;;  %v415_v6 = vsel %vm414_vm15, %v413_v2, 0.0 }
 0x827   :  { %v1184_v50 = vsel %vm1182_vm0, 1.0, %v2259_v8  ;;  %vm1179_vm2 = vmand %vm1177_vm12, %vm291_vm11  ;;  %vm421_vm11 = vcmp.eq.s32.totalorder %v2439_v62, 0  ;;  %v1202_v29 = vceil.f32 %v1200_v34  ;;  %v1524_v62 = vld [vmem:[%s2940_s13] sm:$0xff] }
 0x828   :  { %v1186_v51 = vmul.f32 %v1184_v50, %v1174_v16  ;;  %vm1181_vm4 = vmor %vm1175_vm14, %vm1179_vm2  ;;  %v423_v53 = vsel %vm421_vm11, %v2504_v56, 0.0  ;;  %v1901_v16 = vadd.f32 -1.0, %v457_v11  ;;  %v868_v17 = vsel %vm421_vm11, %v2613_v36, 0.0 }
 0x829   :  { %v1183_v55 = vsel %vm1181_vm4, 1.0, %v2259_v8  ;;  %v1899_v24 = vadd.f32 -1.0, %v423_v53  ;;  %v1909_v19 = vadd.f32 -1.0, %v868_v17  ;;  %v869_v56 = vsel %vm422_vm5, %v2609_v35, 0.0 }
 0x82a   :  { %v1190_v57 = vsel %vm125_vm1, %v1186_v51, 0.0  ;;  %v1185_v63 = vmul.f32 %v1183_v55, %v1173_v18  ;;  %v458_v18 = vsel %vm456_vm6, %v2509_v60, 0.0  ;;  %v461_v23 = vmul.f32 1e+30, %v1901_v16  ;;  %v1195_v60 = vpop.xlane.xlu1 %1194 }
 0x82b   :  { %1191 = vadd.xlane.f32.xlu0 %v1190_v57  ;;  %v427_v14 = vmul.f32 1e+30, %v1899_v24  ;;  %v1902_v20 = vadd.f32 -1.0, %v458_v18  ;;  %v872_v27 = vmul.f32 1e+30, %v1909_v19  ;;  %v1910_v22 = vadd.f32 -1.0, %v869_v56 }
 0x82c   :  { %v1187_v7 = vsel %vm125_vm1, %v1185_v63, 0.0  ;;  %v1199_v25 = vmul.f32 0.5, %v1195_v60  ;;  %vm484_vm2 = vcmp.eq.s32.totalorder %v2372_v3, 1  ;;  %vm450_vm4 = vcmp.eq.s32.totalorder %v2372_v3, 0 }
 0x82d   :  { %1188 = vadd.xlane.f32.xlu1 %v1187_v7  ;;  %v462_v28 = vmul.f32 1e+30, %v1902_v20  ;;  %v873_v31 = vmul.f32 1e+30, %v1910_v22 }
 0x82e   :  { %v1201_v38 = vceil.f32 %v1199_v25  ;;  %v1911_v25 = vadd.f32 -1.0, %v897_v33 }
 0x82f   :  { %863 = vadd.xlane.f32.xlu0 %v862_v4 }
 0x831   :  { %416 = vadd.xlane.f32.xlu1 %v415_v6 }
 0x842   :  { %431 = vperm.xlu1 %2166, %v427_v14  }
 0x845   :  { %436 = vperm.xlu0 %2167, %v428_v26  }
 0x846   :  { %465 = vperm.xlu1 %2166, %v461_v23  }
 0x849   :  { %876 = vperm.xlu0 %2167, %v872_v27  }
 0x84a   :  { %470 = vperm.xlu1 %2166, %v462_v28  }
 0x84e   :  { %881 = vperm.xlu1 %2166, %v873_v31  }
 0x8b8   :  { %v1192_v37 = vpop.xlane.xlu0 %1191 }
 0x8b9   :  { %vm1204_vm9 = vcmp.lt.f32.partialorder %v1192_v37, %v1202_v29 }
 0x8ba   :  { %v1189_v47 = vpop.xlane.xlu1 %1188  ;;  %v1206_v39 = vsel %vm1204_vm9, 1.0, %v2259_v8 }
 0x8bb   :  { %vm1203_vm10 = vcmp.lt.f32.partialorder %v1189_v47, %v1201_v38  ;;  %v2719_v40 = vmul.f32 %v1206_v39, %v2609_v35  ;;  %v901_v38 = vmul.f32 1e+30, %v1911_v25 }
 0x8bc   :  { %v1205_v41 = vsel %vm1203_vm10, 1.0, %v2259_v8  ;;  %v864_v42 = vpop.xlane.xlu0 %863 }
 0x8bd   :  { %v2723_v43 = vmul.f32 %v1205_v41, %v2613_v36  ;;  %v865_v44 = vmax.f32 %v864_v42, 1.0  ;;  %v1366_v46 = vmul.f32 %v2668_v5, %v2719_v40  ;;  %v2729_v48 = vmul.f32 %v2402_v12, %v2719_v40 }
 0x8be   :  { %v417_v50 = vpop.xlane.xlu1 %416  ;;  %v1223_v26 = vmul.f32 %v2719_v40, %v2634_v58  ;;  %v898_v58 = vsel %vm456_vm6, %v2609_v35, 0.0  ;;  %v1445_v29 = vsel %vm422_vm5, %v2719_v40, 0.0  ;;  %v1474_v36 = vsel %vm456_vm6, %v2719_v40, 0.0 }
 0x8bf   :  { %v418_v51 = vmax.f32 %v417_v50, 1.0  ;;  %2198 = vrcp.f32 %v865_v44  ;;  %v1365_v55 = vmul.f32 %v2671_v10, %v2723_v43  ;;  %v2735_v57 = vmul.f32 %v2390_v9, %v2723_v43 }
 0x8c0   :  { %v1212_v63 = vsel %vm125_vm1, %v2729_v48, 0.0  ;;  %v1222_v19 = vmul.f32 %v2723_v43, %v2637_v59  ;;  %v1912_v59 = vadd.f32 -1.0, %v898_v58  ;;  %v1444_v31 = vsel %vm421_vm11, %v2723_v43, 0.0 }
 0x8c1   :  { %2200 = vrcp.f32 %v418_v51  ;;  %v2137_v1 = vpack.c.bf16 %v1366_v46, %v1365_v55  ;;  %v1211_v7 = vsel %vm125_vm1, %v2735_v57, 0.0  ;;  %v1921_v34 = vadd.f32 -1.0, %v1444_v31  ;;  %v1525_v55 = vld [vmem:[%s2940_s13 + $0x8] sm:$0xff] }
 0x8c2   :  { %v1213_v2 = vadd.f32 %v1212_v63, %v1211_v7  ;;  %v902_v60 = vmul.f32 1e+30, %v1912_v59  ;;  %v1922_v35 = vadd.f32 -1.0, %v1445_v29  ;;  %v1473_v47 = vsel %vm455_vm3, %v2723_v43, 0.0  ;;  %v1526_v63 = vld [vmem:[%s2940_s13 + $0x10] sm:$0xff]  ;;  %v432_v7 = vpop.permute.xlu1 %431 }
 0x8c3   :  { %2138 = vmatpush3.bf16.msra.mxu0 %v2137_v1  ;;  %v1448_v37 = vmul.f32 1e+30, %v1921_v34  ;;  %v1923_v41 = vadd.f32 -1.0, %v1473_v47  ;;  %v1924_v44 = vadd.f32 -1.0, %v1474_v36  ;;  %v2146_v61 = vpack.c.bf16 %v1525_v55, %v1524_v62 }
 0x8c4   :  { %v1214_v4 = vrot.slane %v1213_v2, 4  ;;  %2145 = vmatprep.subr.bf16.mxu0 %v2260_v49  ;;  %v1449_v39 = vmul.f32 1e+30, %v1922_v35 }
 0x8c5   :  { %v1477_v42 = vmul.f32 1e+30, %v1923_v41  ;;  %v1478_v46 = vmul.f32 1e+30, %v1924_v44 }
 0x8c6   :  { %2056 = vmatmul.mubr.msk.f32.vlgmr.msra.gmra.mrb[6].mxu0 %vm125_vm1, %v2522_v15  ;;  %v1215_v6 = vadd.f32 %v1214_v4, %v1213_v2  ;;  %v466_v2 = vpop.permute.xlu1 %465 }
 0x8c7   :  { %2077 = vmatprep.mubr.msk.f32.mxu0 %vm2261_vm7, %v2259_v8  ;;  %2147 = vmatpush3.bf16.msra.mxu0 %v2146_v61 }
 0x8c8   :  { %v1216_v53 = vrot.slane %v1215_v6, 2  ;;  %2148 = vmatprep.subr.bf16.mxu0 %v2260_v49 }
 0x8c9   :  { %v2199_v24 = vpop.eup %2198 }
 0x8ca   :  { %v867_v21 = vmul.f32 %v2199_v24, %v2653_v45  ;;  %v1217_v11 = vadd.f32 %v1216_v53, %v1215_v6  ;;  %v471_v4 = vpop.permute.xlu1 %470  ;;  %v437_v6 = vpop.permute.xlu0 %436 }
 0x8cb   :  { %v2201_v13 = vpop.eup %2200  ;;  %v474_v24 = vadd.f32 %v471_v4, %v2476_v32 }
 0x8cc   :  { %v420_v14 = vmul.f32 %v2201_v13, %v2555_v0  ;;  %v1218_v16 = vrot.slane %v1217_v11, 1  ;;  %vm1516_vm12 = vcmp.gt.f32.partialorder %v867_v21, 0.0  ;;  %v1517_v17 = vmul.f32 0.1, %v867_v21 }
 0x8cd   :  { %v473_v13 = vadd.f32 %v466_v2, %v2473_v30 }
 0x8ce   :  { %v1219_v18 = vadd.f32 %v1218_v16, %v1217_v11  ;;  %vm1513_vm13 = vcmp.gt.f32.partialorder %v420_v14, 0.0  ;;  %v1514_v23 = vmul.f32 0.1, %v420_v14  ;;  %v1518_v45 = vsel %vm1516_vm12, %v867_v21, %v1517_v17  ;;  %v882_v53 = vpop.permute.xlu1 %881  ;;  %v877_v21 = vpop.permute.xlu0 %876 }
 0x8cf   :  { %v885_v11 = vadd.f32 %v882_v53, %v2587_v54  ;;  %v440_v16 = vadd.f32 %v437_v6, %v2476_v32  ;;  %v476_v17 = vsel %vm261_vm8, %v474_v24, -inf }
 0x8d0   :  { %v2752_v20 = vmul.f32 %v1223_v26, %v1219_v18  ;;  %v2754_v56 = vmul.f32 %v1222_v19, %v1219_v18  ;;  %v1515_v27 = vsel %vm1513_vm13, %v420_v14, %v1514_v23  ;;  %v1437_v50 = vmul.f32 %v2522_v15, %v1219_v18  ;;  %v1527_v15 = vld [vmem:[%s2940_s13 + $0x18] sm:$0xff] }
 0x8d1   :  { %v2760_v22 = vadd.f32 %v1518_v45, %v1515_v27  ;;  %v2149_v1 = vpack.c.bf16 %v1527_v15, %v1526_v63  ;;  %v884_v14 = vadd.f32 %v877_v21, %v2584_v52  ;;  %v887_v18 = vsel %vm261_vm8, %v885_v11, -inf }
 0x8d2   :  { %v1229_v0 = vsel %vm125_vm1, %v2752_v20, 0.0  ;;  %v1226_v28 = vsel %vm125_vm1, %v2754_v56, 0.0  ;;  %v1438_v51 = vsel %vm414_vm15, %v1437_v50, 0.0  ;;  %v439_v19 = vadd.f32 %v432_v7, %v2473_v30 }
 0x8d3   :  { %1230 = vadd.xlane.f32.xlu0 %v1229_v0  ;;  %1227 = vadd.xlane.f32.xlu1 %v1226_v28  ;;  %v475_v23 = vsel %vm261_vm8, %v473_v13, -inf  ;;  %v886_v0 = vsel %vm261_vm8, %v884_v14, -inf  ;;  %v442_v28 = vsel %vm261_vm8, %v440_v16, -inf }
 0x8d4   :  { %2150 = vmatpush3.bf16.msra.mxu0 %v2149_v1  ;;  %v477_v27 = vmax.f32 %v475_v23, %v476_v17  ;;  %v888_v58 = vmax.f32 %v886_v0, %v887_v18  ;;  %v441_v32 = vsel %vm261_vm8, %v439_v19, -inf }
 0x8d5   :  { %2157 = vmatprep.subr.bf16.mxu0 %v2260_v49  ;;  %v443_v31 = vmax.f32 %v441_v32, %v442_v28 }
 0x8d6   :  { %v478_v33 = vrot.slane %v477_v27, 4 }
 0x8e4   :  { %910 = vperm.xlu1 %2166, %v902_v60   ;;  %v889_v60 = vrot.slane %v888_v58, 4 }
 0x8e6   :  { %v890_v47 = vmax.f32 %v888_v58, %v889_v60 }
 0x8e8   :  { %1452 = vperm.xlu1 %2166, %v1448_v37   ;;  %v444_v37 = vrot.slane %v443_v31, 4  ;;  %v891_v15 = vrot.slane %v890_v47, 2 }
 0x8e9   :  { %905 = vperm.xlu0 %2167, %v901_v38   ;;  %v479_v38 = vmax.f32 %v477_v27, %v478_v33 }
 0x8ea   :  { %v892_v16 = vmax.f32 %v890_v47, %v891_v15 }
 0x8eb   :  { %v480_v63 = vrot.slane %v479_v38, 2 }
 0x8ec   :  { %1457 = vperm.xlu1 %2166, %v1449_v39   ;;  %v893_v32 = vrot.slane %v892_v16, 1 }
 0x8f0   :  { %1481 = vperm.xlu1 %2166, %v1477_v42  }
 0x8f4   :  { %1486 = vperm.xlu1 %2166, %v1478_v46  }
 0x908   :  { %1439 = vadd.xlane.f32.xlu0 %v1438_v51 }
 0x960   :  { %v1231_v26 = vpop.xlane.xlu0 %1230  ;;  %v1228_v45 = vpop.xlane.xlu1 %1227 }
 0x961   :  { %2202 = vrsqrt.f32 %v1231_v26  ;;  %vm1233_vm14 = vcmp.gt.f32.partialorder %v1231_v26, 0.0  ;;  %vm1232_vm0 = vcmp.gt.f32.partialorder %v1228_v45, 0.0 }
 0x962   :  { %2204 = vrsqrt.f32 %v1228_v45 }
 0x964   :  { %v911_v59 = vpop.permute.xlu1 %910 }
 0x965   :  { %v914_v34 = vadd.f32 %v911_v59, %v2587_v54 }
 0x967   :  { %v916_v39 = vsel %vm261_vm8, %v914_v34, -inf }
 0x968   :  { %v906_v30 = vpop.permute.xlu0 %905  ;;  %v1453_v25 = vpop.permute.xlu1 %1452 }
 0x969   :  { %v913_v29 = vadd.f32 %v906_v30, %v2584_v52  ;;  %v1460_v44 = vadd.f32 %v1453_v25, %v2671_v10  ;;  %v445_v52 = vmax.f32 %v443_v31, %v444_v37 }
 0x96b   :  { %v2203_v35 = vpop.eup %2202  ;;  %v915_v41 = vsel %vm261_vm8, %v913_v29, -inf  ;;  %v1462_v2 = vsel %vm261_vm8, %v1460_v44, -inf  ;;  %v446_v21 = vrot.slane %v445_v52, 2 }
 0x96c   :  { %v2205_v36 = vpop.eup %2204  ;;  %v1237_v42 = vsel %vm1233_vm14, %v2203_v35, 0.0  ;;  %v917_v46 = vmax.f32 %v915_v41, %v916_v39  ;;  %v1458_v51 = vpop.permute.xlu1 %1457 }
 0x96d   :  { %v1236_v54 = vsel %vm1232_vm0, %v2205_v36, 0.0  ;;  %v1241_v50 = vmul.f32 %v2402_v12, %v1237_v42  ;;  %v1461_v61 = vadd.f32 %v1458_v51, %v2668_v5  ;;  %v447_v45 = vmax.f32 %v445_v52, %v446_v21 }
 0x96e   :  { %v1240_v62 = vmul.f32 %v2390_v9, %v1236_v54  ;;  %v918_v55 = vrot.slane %v917_v46, 4  ;;  %v481_v9 = vmax.f32 %v479_v38, %v480_v63  ;;  %v894_v38 = vmax.f32 %v892_v16, %v893_v32 }
 0x96f   :  { %v1243_v1 = vsel %vm125_vm1, %v1241_v50, 0.0  ;;  %v1463_v6 = vsel %vm261_vm8, %v1461_v61, -inf  ;;  %v448_v30 = vrot.slane %v447_v45, 1  ;;  %v1239_v47 = vmul.f32 %v1237_v42, %v2752_v20  ;;  %v1529_v50 = vld [vmem:[%s2940_s13 + $0x28] sm:$0xff] }
 0x970   :  { %v1242_v7 = vsel %vm125_vm1, %v1240_v62, 0.0  ;;  %v919_v4 = vmax.f32 %v917_v46, %v918_v55  ;;  %v1464_v12 = vmax.f32 %v1462_v2, %v1463_v6  ;;  %v1482_v24 = vpop.permute.xlu1 %1481  ;;  %v482_v28 = vrot.slane %v481_v9, 1  ;;  %v1528_v46 = vld [vmem:[%s2940_s13 + $0x20] sm:$0xff]  ;;  %v1531_v2 = vld [vmem:[%s2940_s13 + $0x38] sm:$0xff] }
 0x971   :  { %v1244_v53 = vadd.f32 %v1243_v1, %v1242_v7  ;;  %v1489_v18 = vadd.f32 %v1482_v24, %v2671_v10  ;;  %v449_v41 = vmax.f32 %v447_v45, %v448_v30  ;;  %v895_v42 = vsel %vm450_vm4, %v894_v38, 0.0  ;;  %v1530_v7 = vld [vmem:[%s2940_s13 + $0x30] sm:$0xff] }
 0x972   :  { %v920_v11 = vrot.slane %v919_v4, 2  ;;  %v1465_v14 = vrot.slane %v1464_v12, 4  ;;  %v483_v37 = vmax.f32 %v481_v9, %v482_v28  ;;  %v2140_v63 = vpack.c.bf16 %v1529_v50, %v1528_v46 }
 0x973   :  { %v1245_v13 = vrot.slane %v1244_v53, 4  ;;  %v1491_v31 = vsel %vm261_vm8, %v1489_v18, -inf  ;;  %v453_v15 = vsel %vm450_vm4, %v449_v41, 0.0  ;;  %v1344_v46 = vadd.f32 %v2719_v40, %v2723_v43 }
 0x974   :  { %v921_v17 = vmax.f32 %v919_v4, %v920_v11  ;;  %v1466_v19 = vmax.f32 %v1464_v12, %v1465_v14  ;;  %v1487_v23 = vpop.permute.xlu1 %1486  ;;  %v487_v20 = vsel %vm484_vm2, %v483_v37, 0.0 }
 0x975   :  { %v1246_v26 = vadd.f32 %v1245_v13, %v1244_v53  ;;  %v1490_v0 = vadd.f32 %v1487_v23, %v2668_v5  ;;  %v1238_v5 = vmul.f32 %v1236_v54, %v2754_v56  ;;  %v488_v4 = vadd.f32 %v487_v20, %v453_v15  ;;  %v1777_v20 = vld [vmem:[%s2944_s17 + $0x8] sm:$0xff] }
 0x976   :  { %v922_v27 = vrot.slane %v921_v17, 1  ;;  %v1467_v59 = vrot.slane %v1466_v19, 2  ;;  %v2143_v53 = vpack.c.bf16 %v1531_v2, %v1530_v7  ;;  %v1345_v50 = vrot.slane %v1344_v46, 4 }
 0x977   :  { %v1247_v58 = vrot.slane %v1246_v26, 2  ;;  %v1492_v33 = vsel %vm261_vm8, %v1490_v0, -inf  ;;  %v1503_v24 = vmul.f32 0.1, %v488_v4  ;;  %vm1502_vm11 = vcmp.gt.f32.partialorder %v488_v4, 0.0 }
 0x978   :  { %v1493_v34 = vmax.f32 %v1491_v31, %v1492_v33  ;;  %v923_v25 = vmax.f32 %v921_v17, %v922_v27  ;;  %v1468_v35 = vmax.f32 %v1466_v19, %v1467_v59  ;;  %v1689_v59 = vld [vmem:[%s2942_s15] sm:$0xff]  ;;  %v1690_v31 = vld [vmem:[%s2942_s15 + $0x8] sm:$0xff] }
 0x979   :  { %v1248_v60 = vadd.f32 %v1247_v58, %v1246_v26  ;;  %v1504_v16 = vsel %vm1502_vm11, %v488_v4, %v1503_v24  ;;  %v2152_v33 = vpack.c.bf16 %v1690_v31, %v1689_v59 }
 0x97a   :  { %v1494_v29 = vrot.slane %v1493_v34, 4  ;;  %v924_v36 = vsel %vm484_vm2, %v923_v25, 0.0  ;;  %v1469_v54 = vrot.slane %v1468_v35, 1 }
 0x97b   :  { %v1249_v10 = vrot.slane %v1248_v60, 1  ;;  %v925_v55 = vadd.f32 %v924_v36, %v895_v42 }
 0x97c   :  { %v1495_v44 = vmax.f32 %v1493_v34, %v1494_v29 }
 0x97d   :  { %v1250_v39 = vadd.f32 %v1249_v10, %v1248_v60  ;;  %vm1505_vm15 = vcmp.gt.f32.partialorder %v925_v55, 0.0 }
 0x97e   :  { %v1496_v52 = vrot.slane %v1495_v44, 2 }
 0x97f   :  { %v1252_v51 = vmul.f32 %v1250_v39, %v1239_v47  ;;  %v1251_v56 = vmul.f32 %v1250_v39, %v1238_v5  ;;  %v1927_v5 = vld [vmem:[%s2941_s14] ss:$0 sm:$0xff] }
 0x980   :  { %v1497_v1 = vmax.f32 %v1495_v44, %v1496_v52 }
 0x981   :  { %v1254_v62 = vsub.f32 %v2729_v48, %v1252_v51  ;;  %v1253_v61 = vsub.f32 %v2735_v57, %v1251_v56  ;;  %v1470_v48 = vmax.f32 %v1468_v35, %v1469_v54  ;;  %v1506_v57 = vmul.f32 0.1, %v925_v55  ;;  %v1776_v56 = vld [vmem:[%s2944_s17] sm:$0xff] }
 0x982   :  { %v1498_v6 = vrot.slane %v1497_v1, 1  ;;  %v1346_v51 = vadd.f32 %v1345_v50, %v1344_v46  ;;  %v2158_v54 = vpack.c.bf16 %v1777_v20, %v1776_v56 }
 0x983   :  { %2048 = vmatprep.mubr.msk.f32.mxu1 %vm125_vm1, %v1253_v61  ;;  %v1471_v21 = vsel %vm450_vm4, %v1470_v48, 0.0  ;;  %v1507_v13 = vsel %vm1505_vm15, %v925_v55, %v1506_v57 }
 0x984   :  { %2049 = vmatmul.mubr.msk.f32.vlgmr.msra.gmra.mrb[8].mxu1 %vm125_vm1, %v1254_v62  ;;  %v1499_v12 = vmax.f32 %v1497_v1, %v1498_v6  ;;  %v1508_v17 = vadd.f32 %v1507_v13, %v1504_v16  ;;  %v1347_v42 = vrot.slane %v1346_v51, 2 }
 0x985   :  { %2141 = vmatpush3.bf16.msra.mxu1 %v2140_v63  ;;  %2066 = vmatprep.mubr.msk.f32.mxu1 %vm2261_vm7, %v2259_v8 }
 0x986   :  { %2142 = vmatprep.subr.bf16.mxu1 %v2260_v49  ;;  %v1500_v11 = vsel %vm484_vm2, %v1499_v12, 0.0  ;;  %v1348_v52 = vadd.f32 %v1347_v42, %v1346_v51 }
 0x987   :  { %v1501_v9 = vadd.f32 %v1500_v11, %v1471_v21 }
 0x988   :  { %v1349_v62 = vrot.slane %v1348_v52, 1 }
 0x989   :  { %2144 = vmatpush3.bf16.msra.mxu1 %v2143_v53  ;;  %v1510_v14 = vmul.f32 0.1, %v1501_v9  ;;  %vm1509_vm5 = vcmp.gt.f32.partialorder %v1501_v9, 0.0 }
 0x98a   :  { %2151 = vmatprep.subr.bf16.mxu1 %v2260_v49  ;;  %v1350_v55 = vadd.f32 %v1349_v62, %v1348_v52 }
 0x98b   :  { %v1511_v18 = vsel %vm1509_vm5, %v1501_v9, %v1510_v14 }
 0x98c   :  { %v1512_v26 = vadd.f32 %v1511_v18, %v1508_v17  ;;  %v1351_v7 = vmax.f32 %v1350_v55, 1.0 }
 0x98e   :  { %2078 = vmatmul.mubr.msk.f32.vlgmr.msra.gmra.mrb[8].mxu0 %vm261_vm8, %v1512_v26 }
 0x98f   :  { %2095 = vmatprep.mubr.msk.f32.mxu0 %vm2261_vm7, %v2259_v8  ;;  %2159 = vmatpush3.bf16.msra.mxu0 %v2158_v54 }
 0x995   :  { %v1440_v19 = vpop.xlane.xlu0 %1439 }
 0x996   :  { %v1441_v23 = vmax.f32 %v1440_v19, 1.0 }
 0x998   :  { %2206 = vrcp.f32 %v1441_v23 }
 0x999   :  { %v1433_v3 = vpop.f32.mrb[6].mxu0  ;;  %2208 = vrcp.f32 %v1351_v7 }
 0x99a   :  { %v2057_v45 = vpop.f32.mrb[7].mxu0 }
 0x9a2   :  { %v2207_v27 = vpop.eup %2206 }
 0x9a3   :  { %v1443_v0 = vmul.f32 %v2207_v27, %v1433_v3  ;;  %v2209_v24 = vpop.eup %2208 }
 0x9a5   :  { %vm1520_vm3 = vcmp.gt.f32.partialorder %v1443_v0, 0.0  ;;  %v1521_v28 = vmul.f32 0.1, %v1443_v0 }
 0x9a7   :  { %v1522_v58 = vsel %vm1520_vm3, %v1443_v0, %v1521_v28 }
 0x9a8   :  { %v1523_v32 = vadd.f32 %v1522_v58, %v2760_v22  ;;  %v1691_v22 = vld [vmem:[%s2942_s15 + $0x10] sm:$0xff] }
 0x9aa   :  { %2067 = vmatmul.mubr.msk.f32.vlgmr.msra.gmra.mrb[10].mxu1 %vm261_vm8, %v1523_v32 }
 0x9ab   :  { %2088 = vmatprep.mubr.msk.f32.mxu1 %vm2261_vm7, %v2259_v8  ;;  %2153 = vmatpush3.bf16.msra.mxu1 %v2152_v33  ;;  %v1692_v8 = vld [vmem:[%s2942_s15 + $0x18] sm:$0xff] }
 0x9ac   :  { %2154 = vmatprep.subr.bf16.mxu1 %v2260_v49  ;;  %v2155_v60 = vpack.c.bf16 %v1692_v8, %v1691_v22 }
 0x9af   :  { %2156 = vmatpush3.bf16.msra.mxu1 %v2155_v60 }
 0xa57   :  { %v2050_v34 = vpop.f32.mrb[8].mxu1 }
 0xa58   :  { %v1337_v30 = vand.u32 2147483647, %v2050_v34  ;;  %v1327_v25 = vpop.f32.mrb[9].mxu1 }
 0xa59   :  { %v1336_v10 = vand.u32 2147483647, %v1327_v25 }
 0xa5a   :  { %v1341_v29 = vsel %vm261_vm8, %v1337_v30, 0.0 }
 0xa5b   :  { %1342 = vadd.xlane.f32.xlu0 %v1341_v29  ;;  %v1338_v37 = vsel %vm261_vm8, %v1336_v10, 0.0 }
 0xa5c   :  { %1339 = vadd.xlane.f32.xlu1 %v1338_v37 }
 0xa61   :  { %v1674_v49 = vpop.f32.mrb[8].mxu0 }
 0xa62   :  { %v2079_v38 = vpop.f32.mrb[9].mxu0 }
 0xa7d   :  { %v1601_v35 = vpop.f32.mrb[10].mxu1 }
 0xa7e   :  { %v1675_v47 = vadd.f32 %v1674_v49, %v1601_v35  ;;  %v2068_v39 = vpop.f32.mrb[11].mxu1 }
 0xa80   :  { %v1685_v41 = vadd.f32 %v1927_v5, %v1675_v47 }
 0xa82   :  { %vm1686_vm7 = vcmp.gt.f32.partialorder %v1685_v41, 0.0  ;;  %v1687_v36 = vmul.f32 0.1, %v1685_v41 }
 0xa84   :  { %v1688_v44 = vsel %vm1686_vm7, %v1685_v41, %v1687_v36 }
 0xa85   :  { %2089 = vmatmul.mubr.msk.f32.vlgmr.msra.gmra.mrb[12].mxu1 %vm261_vm8, %v1688_v44  ;;  %vm1363_vm8 = vcmask 0  }
 0xae8   :  { %v1343_v61 = vpop.xlane.xlu0 %1342 }
 0xae9   :  { %v1353_v63 = vmul.f32 %v1343_v61, %v2719_v40  ;;  %v1340_v15 = vpop.xlane.xlu1 %1339  ;;  %v1928_v40 = vld [vmem:[%s2943_s16] ss:$0 sm:$0xff] }
 0xaea   :  { %v1352_v1 = vmul.f32 %v1340_v15, %v2723_v43 }
 0xaec   :  { %v1354_v2 = vadd.f32 %v1353_v63, %v1352_v1 }
 0xaee   :  { %v1355_v4 = vrot.slane %v1354_v2, 4 }
 0xaf0   :  { %v1356_v48 = vadd.f32 %v1355_v4, %v1354_v2 }
 0xaf2   :  { %v1357_v6 = vrot.slane %v1356_v48, 2 }
 0xaf4   :  { %v1358_v57 = vadd.f32 %v1357_v6, %v1356_v48 }
 0xaf6   :  { %v1359_v53 = vrot.slane %v1358_v57, 1 }
 0xaf8   :  { %v1360_v12 = vadd.f32 %v1359_v53, %v1358_v57 }
 0xafa   :  { %v1362_v21 = vmul.f32 %v2209_v24, %v1360_v12 }
 0xafc   :  { %1364 = vst.msk [vmem:[#allocation4] sm:$0x1] %vm1363_vm8, %v1362_v21 }
 0xb58   :  { %v1769_v11 = vpop.f32.mrb[12].mxu1 }
 0xb59   :  { %v1770_v9 = vadd.f32 %v1928_v40, %v1769_v11  ;;  %v2090_v43 = vpop.f32.mrb[13].mxu1 }
 0xb5b   :  { %vm1773_vm6 = vcmp.gt.f32.partialorder %v1770_v9, 0.0  ;;  %v1774_v13 = vmul.f32 0.1, %v1770_v9 }
 0xb5d   :  { %v1775_v14 = vsel %vm1773_vm6, %v1770_v9, %v1774_v13 }
 0xb5e   :  { %2096 = vmatmul.mubr.msk.f32.vlgmr.msra.gmra.mrb[10].mxu0 %vm125_vm1, %v1775_v14 }
 0xb5f   :  { %2221 = shalt.err (!%p2218_p4)
}
 0xb60   :  { %s2222_s5 = scalar_lea.hbm %s2947_s20, 16 }
 0xb61   :  { %p2223_p5 = scmp.ne.s32.totalorder %s2947_s20, %s2222_s5  ;;  %p2226_p6 = scmp.lt.u32.totalorder %s2222_s5, %s2947_s20 }
 0xb63   :  { %p2228_p7 = pnand %p2226_p6, %p2223_p5 }
 0xb65   :  { %2231 = shalt.err (!%p2228_p7)
}
 0xb66   :  { %1879 = dma.vmem_to_hbm [thread:$0]  %s1877_s10, 16, %s2947_s20, [#allocation5]   ;;  %v1930_v16 = vld [vmem:[%s2945_s18] ss:$0 sm:$0xff]  ;;  %vm1858_vm1 = vcmask 238592  }
 0xb67   :  { %s2263_s26 = smov [#allocation2]  }
 0xb68   :  { %s1866_s8 = sshll.u32 %s2263_s26, 4  ;;  %s1867_s8 = int_to_ptr.vmem [resolvable:$true] %s1866_s8 }
 0xb69   :  { %s2232_s27 = scalar_lea.vmem %s1867_s8, 32  ;;  %p2237_p9 = scmp.lt.s32.totalorder %s1867_s8, %s1867_s8 }
 0xb6a   :  { %p2233_p8 = scmp.ne.s32.totalorder %s1867_s8, %s2232_s27  ;;  %p2238_p10 = scmp.lt.s32.totalorder %s2232_s27, %s2232_s27 }
 0xb6c   :  { %p2239_p11 = por %p2238_p10, %p2237_p9 }
 0xb6e   :  { %p2240_p12 = pnand %p2239_p11, %p2233_p8 }
 0xc31   :  { %v1854_v17 = vpop.f32.mrb[10].mxu0 }
 0xc32   :  { %v1855_v18 = vadd.f32 %v1930_v16, %v1854_v17  ;;  %v2097_v26 = vpop.f32.mrb[11].mxu0 }
 0xc34   :  { %1859 = vst.msk [vmem:[#allocation2] sm:$0x3] %vm1858_vm1, %v1855_v18 }
 0xc35   :  { %2243 = shalt.err (!%p2240_p12)
}
 0xc36   :  { %s2244_s28 = scalar_lea.hbm %s2946_s19, 32 }
 0xc37   :  { %p2245_p13 = scmp.ne.s32.totalorder %s2946_s19, %s2244_s28  ;;  %p2248_p0 = scmp.lt.u32.totalorder %s2244_s28, %s2946_s19 }
 0xc39   :  { %p2250_p1 = pnand %p2248_p0, %p2245_p13 }
 0xc3b   :  { %2253 = shalt.err (!%p2250_p1)
}
 0xc3c   :  { %1869 = dma.vmem_to_hbm [thread:$0]  %s1867_s8, 32, %s2946_s19, [#allocation3]  }
 0xc3d   :  { %2254 = dma.done.wait [#allocation3], 32  }
 0xc3e   :  { %2255 = vsyncadd [#allocation3], 4294967264 }
 0xc3f   :  { %2256 = dma.done.wait [#allocation5], 16  }
 0xc40   :  { %2257 = vsyncadd [#allocation5], 4294967280 }
 0xc41   :  { %1886 = vsyncpa [#allocation3], 1 }
 0xc42   :  { %1887 = vsyncpa [#allocation5], 1 }

</bundles_post_ra>
